<compile_context>
chip_gen: v6e
topology: v6e:2x2x1
jax: 0.10.0
libtpu: 0.0.40
codegen_flags: <defaults>
</compile_context>

<pallas_src>
import jax
import jax.numpy as jnp
from jax import lax
from jax.experimental import pallas as pl
from jax.experimental.pallas import tpu as pltpu


IN_F = 21        # logical input features
HID = 50         # logical hidden width
HID_PAD = 64     # padded hidden width (zero pads -> exact same math through ReLU)
OUT_F = 4        # logical output features

_ROW_CHUNK = 512     # rows per inner-loop iteration (bounds vreg pressure)
_MAX_TILE_B = 8192   # rows per grid step (VMEM: x 2x672KB + packed out 2x128KB)
_PACK = 32           # batch rows packed into one 128-lane output row (32*4 = 128)


def _round_up(n, m):
    return ((n + m - 1) // m) * m


# ----------------------------------------------------------------------------
# One-time capability probe for the lane-dense packed output store.
# ----------------------------------------------------------------------------
_PACKED_OK = None


def _packed_store_supported():
    """Can Mosaic lower the (rows, 4) -> (rows/32, 128) value reshape used for
    lane-dense output stores? Cached; falls back to (rows, 4) stores if not."""
    global _PACKED_OK
    if _PACKED_OK is None:
        def probe_kernel(x_ref, o_ref):
            o_ref[...] = x_ref[...].reshape(o_ref.shape)

        try:
            with jax.ensure_compile_time_eval():
                x = jnp.arange(_ROW_CHUNK * OUT_F, dtype=jnp.float32)
                x = x.reshape(_ROW_CHUNK, OUT_F)
                out = pl.pallas_call(
                    probe_kernel,
                    out_shape=jax.ShapeDtypeStruct(
                        (_ROW_CHUNK // _PACK, _PACK * OUT_F), jnp.float32),
                )(x)
                _PACKED_OK = bool(jnp.array_equal(out, x.reshape(out.shape)))
        except Exception:
            _PACKED_OK = False
    return _PACKED_OK


# ----------------------------------------------------------------------------
# Tiling policy
# ----------------------------------------------------------------------------
def _choose_tile_b(B):
    """Rows per grid step: multiple of _ROW_CHUNK, <= _MAX_TILE_B, and an even
    number of grid steps (>=4 when the batch is big enough) so v7x's two
    TensorCores both get >=2 pipelined steps; v5e/v6e just see bigger DMAs."""
    b_al = _round_up(max(B, _ROW_CHUNK), _ROW_CHUNK)
    nt = pl.cdiv(b_al, _MAX_TILE_B)
    if b_al >= 4 * _ROW_CHUNK:
        nt = max(nt, 4)
    elif b_al >= 2 * _ROW_CHUNK:
        nt = max(nt, 2)
    if nt > 1:
        nt = _round_up(nt, 2)
    tile_b = _round_up(pl.cdiv(b_al, nt), _ROW_CHUNK)
    return min(tile_b, b_al)


# ----------------------------------------------------------------------------
# Kernel
# ----------------------------------------------------------------------------
def _make_kernel(packed, n_chunks):
    chunk = _ROW_CHUNK
    pr = chunk // _PACK          # packed output rows produced per chunk

    def kernel(x_ref, w1_ref, b1_ref, w2_ref, b2_ref, w3_ref, b3_ref, o_ref):
        # Epilogue dtype: bf16 on chips with a bf16 VPU (set in to_kernel_params),
        # f32 otherwise. Both are numerically fine; this is a perf choice only.
        epi = b1_ref.dtype
        w1, b1 = w1_ref[...], b1_ref[...]
        w2, b2 = w2_ref[...], b2_ref[...]
        w3, b3 = w3_ref[...], b3_ref[...]

        def body(c, carry):
            r0 = pl.multiple_of(c * chunk, chunk)
            x = x_ref[pl.ds(r0, chunk), :].astype(jnp.bfloat16)

            h = jnp.dot(x, w1, preferred_element_type=jnp.float32).astype(epi)
            h = jnp.maximum(h + b1, 0.0).astype(jnp.bfloat16)
            h = jnp.dot(h, w2, preferred_element_type=jnp.float32).astype(epi)
            h = jnp.maximum(h + b2, 0.0).astype(jnp.bfloat16)
            h = jnp.dot(h, w3, preferred_element_type=jnp.float32) + b3
            h = jnp.maximum(h, 0.0)

            if packed:
                # 32 batch rows x 4 feats -> one dense 128-lane row (unmasked vst).
                o0 = pl.multiple_of(c * pr, pr)
                o_ref[pl.ds(o0, pr), :] = h.reshape(pr, _PACK * OUT_F)
            else:
                o_ref[pl.ds(r0, chunk), :] = h
            return carry

        lax.fori_loop(0, n_chunks, body, 0, unroll=False)

    return kernel


# ----------------------------------------------------------------------------
# Wrapper
# ----------------------------------------------------------------------------
def _mlp_jnp(x, p):
    """Pure-jnp f32 fallback for tiny batches (kernel launch overhead dominates)."""
    f32 = lambda a: a.astype(jnp.float32)
    h = jnp.maximum(jnp.dot(x, f32(p["w1"])) + f32(p["b1"]), 0.0)
    h = jnp.maximum(jnp.dot(h, f32(p["w2"])) + f32(p["b2"]), 0.0)
    return jnp.maximum(jnp.dot(h, f32(p["w3"])) + f32(p["b3"]), 0.0)


def net_forward(x, params, *, min_kernel_batch=256):
    """Forward pass of `Net`. x: [B, 21] float32 -> [B, 4] float32."""
    B, F = x.shape
    assert F == IN_F

    if B < min_kernel_batch:        # ~60 KFLOP total at tiny B: plain XLA wins
        return _mlp_jnp(x, params)

    w1, b1 = params["w1"], params["b1"]
    w2, b2 = params["w2"], params["b2"]
    w3, b3 = params["w3"], params["b3"]

    tile_b = _choose_tile_b(B)
    nt = pl.cdiv(B, tile_b)
    b_pad = nt * tile_b
    x_in = x if b_pad == B else jnp.pad(x, ((0, b_pad - B), (0, 0)))

    packed = _packed_store_supported()
    kernel = _make_kernel(packed, tile_b // _ROW_CHUNK)

    if packed:
        out_shape = jax.ShapeDtypeStruct((b_pad // _PACK, _PACK * OUT_F), jnp.float32)
        out_spec = pl.BlockSpec((tile_b // _PACK, _PACK * OUT_F), lambda i: (i, 0))
    else:
        # TODO(synk): lane-sparse (tile_b, 4) store path — correct fallback for
        # Mosaic versions that cannot lower the packing reshape.
        out_shape = jax.ShapeDtypeStruct((b_pad, OUT_F), jnp.float32)
        out_spec = pl.BlockSpec((tile_b, OUT_F), lambda i: (i, 0))

    def const_spec(shape):
        return pl.BlockSpec(shape, lambda i: (0,) * len(shape))

    flops = 2 * B * (IN_F * HID + HID * HID + HID * OUT_F)
    param_bytes = sum(int(a.size) * a.dtype.itemsize
                      for a in (w1, b1, w2, b2, w3, b3))
    bytes_accessed = B * IN_F * 4 + B * OUT_F * 4 + param_bytes

    out = pl.pallas_call(
        kernel,
        out_shape=out_shape,
        grid_spec=pltpu.PrefetchScalarGridSpec(
            num_scalar_prefetch=0,
            grid=(nt,),
            in_specs=[
                pl.BlockSpec((tile_b, F), lambda i: (i, 0)),
                const_spec(w1.shape), const_spec(b1.shape),
                const_spec(w2.shape), const_spec(b2.shape),
                const_spec(w3.shape), const_spec(b3.shape),
            ],
            out_specs=out_spec,
        ),
        compiler_params=pltpu.CompilerParams(
            dimension_semantics=("parallel",),
        ),
        cost_estimate=pl.CostEstimate(
            flops=flops, transcendentals=0, bytes_accessed=bytes_accessed),
    )(x_in, w1, b1, w2, b2, w3, b3)

    if packed:
        out = out.reshape(b_pad, OUT_F)   # row-major repack -> free view
    return out if b_pad == B else out[:B]


# ----------------------------------------------------------------------------
# Parameters
# ----------------------------------------------------------------------------
def init_params(key):
    """PyTorch-style Linear init (U(-1/sqrt(fan_in), 1/sqrt(fan_in))), hidden
    width zero-padded 50->64 (exact through ReLU). PyTorch stores weight as
    (out, in); we store the transpose (in, out) so the kernel does y = x @ W + b."""
    ks = jax.random.split(key, 6)

    def linear(kw, kb, fan_in, fan_out, pad_in, pad_out):
        bound = 1.0 / (fan_in ** 0.5)
        w = jax.random.uniform(kw, (fan_in, fan_out), jnp.float32, -bound, bound)
        b = jax.random.uniform(kb, (1, fan_out), jnp.float32, -bound, bound)
        w = jnp.pad(w, ((0, pad_in - fan_in), (0, pad_out - fan_out)))
        b = jnp.pad(b, ((0, 0), (0, pad_out - fan_out)))
        return w, b

    w1, b1 = linear(ks[0], ks[1], IN_F, HID, IN_F, HID_PAD)
    w2, b2 = linear(ks[2], ks[3], HID, HID, HID_PAD, HID_PAD)
    w3, b3 = linear(ks[4], ks[5], HID, OUT_F, HID_PAD, OUT_F)
    return {"w1": w1, "b1": b1, "w2": w2, "b2": b2, "w3": w3, "b3": b3}


def _default_bf16_epilogue():
    """bf16 bias+ReLU epilogue only where the VPU is bf16-capable (v6e / v7x)."""
    try:
        kind = jax.devices()[0].device_kind.lower()
    except Exception:
        return False
    return any(t in kind for t in ("v6", "v7", "trillium"))


def to_kernel_params(p, bf16_epilogue=None):
    """bf16 weights for the MXU path. Hidden-layer biases are cast to bf16 on
    bf16-VPU chips so the kernel's epilogue runs in bf16 (the kernel picks its
    epilogue dtype from b1/b2); b3 stays f32 (f32 output, v5e-safe default)."""
    if bf16_epilogue is None:
        bf16_epilogue = _default_bf16_epilogue()
    out = {}
    for k, v in p.items():
        if k.startswith("w"):
            out[k] = v.astype(jnp.bfloat16)
        elif k in ("b1", "b2") and bf16_epilogue:
            out[k] = v.astype(jnp.bfloat16)
        else:
            out[k] = v
    return out


def _reference(x, p_f32):
    h = jnp.maximum(x @ p_f32["w1"] + p_f32["b1"], 0.0)
    h = jnp.maximum(h @ p_f32["w2"] + p_f32["b2"], 0.0)
    return jnp.maximum(h @ p_f32["w3"] + p_f32["b3"], 0.0)


if __name__ == "__main__":
    key = jax.random.PRNGKey(0)
    k_x, k_p = jax.random.split(key)

    # Large enough batch to exercise the tiled/pipelined kernel path
    # (tile_b=1024, grid=(4,), 2 inner chunks per step).
    B = 4096
    x = jax.random.normal(k_x, (B, IN_F), dtype=jnp.float32)

    params_f32 = init_params(k_p)            # f32 master copy (reference)
    kernel_params = to_kernel_params(params_f32)

    fwd = jax.jit(net_forward)
    out = jax.block_until_ready(fwd(x, kernel_params))

    ref = _reference(x, params_f32)
    assert out.shape == (B, OUT_F)
    # bf16 MXU operands (+ bf16 epilogue on v6e/v7x) with f32 accumulation
    # => relaxed tolerance vs the f32 reference.
    assert jnp.allclose(out, ref, atol=5e-2, rtol=5e-2), \
        float(jnp.max(jnp.abs(out - ref)))

    # Batch that is not a multiple of the tile (exercises padding + slicing).
    x_odd = x[:777]
    out_odd = jax.block_until_ready(fwd(x_odd, kernel_params))
    assert out_odd.shape == (777, OUT_F)
    assert jnp.allclose(out_odd, ref[:777], atol=5e-2, rtol=5e-2)

    # Tiny batch -> pure-jnp fallback path (kernel bypassed by design).
    x_small = x[:8]
    out_small = jax.block_until_ready(fwd(x_small, kernel_params))
    assert out_small.shape == (8, OUT_F)
    assert jnp.allclose(out_small, ref[:8], atol=5e-2, rtol=5e-2)

    print("KERNEL_OK")
</pallas_src>

<mosaic_0001>
module attributes {stable_mosaic.version = 11 : i64} {
  func.func @kernel(%arg0: i32, %arg1: memref<1024x21xf32, #tpu.memory_space<vmem>>, %arg2: memref<21x64xbf16, #tpu.memory_space<vmem>>, %arg3: memref<1x64xf32, #tpu.memory_space<vmem>>, %arg4: memref<64x64xbf16, #tpu.memory_space<vmem>>, %arg5: memref<1x64xf32, #tpu.memory_space<vmem>>, %arg6: memref<64x4xbf16, #tpu.memory_space<vmem>>, %arg7: memref<1x4xf32, #tpu.memory_space<vmem>>, %arg8: memref<1024x4xf32, #tpu.memory_space<vmem>>) attributes {dimension_semantics = [#tpu.dimension_semantics<parallel>], iteration_bounds = array<i64: 4>, scalar_prefetch = 0 : i64, scratch_operands = 0 : i64, tpu.core_type = #tpu.core_type<tc>, window_params = [{transform_indices = @transform_0, window_bounds = array<i64: 1024, 21>}, {pipeline_mode = #tpu.pipeline_mode<synchronous>, transform_indices = @transform_1, window_bounds = array<i64: 21, 64>}, {pipeline_mode = #tpu.pipeline_mode<synchronous>, transform_indices = @transform_2, window_bounds = array<i64: 1, 64>}, {pipeline_mode = #tpu.pipeline_mode<synchronous>, transform_indices = @transform_3, window_bounds = array<i64: 64, 64>}, {pipeline_mode = #tpu.pipeline_mode<synchronous>, transform_indices = @transform_4, window_bounds = array<i64: 1, 64>}, {pipeline_mode = #tpu.pipeline_mode<synchronous>, transform_indices = @transform_5, window_bounds = array<i64: 64, 4>}, {pipeline_mode = #tpu.pipeline_mode<synchronous>, transform_indices = @transform_6, window_bounds = array<i64: 1, 4>}, {transform_indices = @transform_7, window_bounds = array<i64: 1024, 4>}]} {
    %c0 = arith.constant 0 : index
    %c0_0 = arith.constant 0 : index
    %0 = vector.load %arg2[%c0, %c0_0] : memref<21x64xbf16, #tpu.memory_space<vmem>>, vector<21x64xbf16>
    %c0_1 = arith.constant 0 : index
    %c0_2 = arith.constant 0 : index
    %1 = vector.load %arg3[%c0_1, %c0_2] : memref<1x64xf32, #tpu.memory_space<vmem>>, vector<1x64xf32>
    %c0_3 = arith.constant 0 : index
    %c0_4 = arith.constant 0 : index
    %2 = vector.load %arg4[%c0_3, %c0_4] : memref<64x64xbf16, #tpu.memory_space<vmem>>, vector<64x64xbf16>
    %c0_5 = arith.constant 0 : index
    %c0_6 = arith.constant 0 : index
    %3 = vector.load %arg5[%c0_5, %c0_6] : memref<1x64xf32, #tpu.memory_space<vmem>>, vector<1x64xf32>
    %c0_7 = arith.constant 0 : index
    %c0_8 = arith.constant 0 : index
    %4 = vector.load %arg6[%c0_7, %c0_8] : memref<64x4xbf16, #tpu.memory_space<vmem>>, vector<64x4xbf16>
    %c0_9 = arith.constant 0 : index
    %c0_10 = arith.constant 0 : index
    %5 = vector.load %arg7[%c0_9, %c0_10] : memref<1x4xf32, #tpu.memory_space<vmem>>, vector<1x4xf32>
    %c0_i32 = arith.constant 0 : i32
    %c2_i32 = arith.constant 2 : i32
    %6 = arith.addi %c0_i32, %c2_i32 : i32
    %c1_i32 = arith.constant 1 : i32
    scf.for %arg9 = %c0_i32 to %6 step %c1_i32  : i32 {
      %c512_i32 = arith.constant 512 : i32
      %7 = arith.muli %arg9, %c512_i32 : i32
      %8 = tpu.assume_multiple %7, 512 : i32
      %9 = arith.index_cast %8 : i32 to index
      %c0_12 = arith.constant 0 : index
      %10 = vector.load %arg1[%9, %c0_12] : memref<1024x21xf32, #tpu.memory_space<vmem>>, vector<512x21xf32>
      %11 = arith.truncf %10 : vector<512x21xf32> to vector<512x21xbf16>
      %cst = arith.constant dense<0.000000e+00> : vector<512x64xf32>
      %12 = tpu.matmul %11, %0, %cst {dimension_numbers = #tpu.dot_dimension_numbers<[1], [0], [0], [1], [0, 0, 1, 1], [], []>} : vector<512x21xbf16>, vector<21x64xbf16>, vector<512x64xf32> -> vector<512x64xf32>
      %13 = vector.broadcast %1 : vector<1x64xf32> to vector<512x64xf32>
      %14 = arith.addf %12, %13 : vector<512x64xf32>
      %cst_13 = arith.constant 0.000000e+00 : f32
      %15 = vector.broadcast %cst_13 : f32 to vector<512x64xf32>
      %16 = arith.maximumf %14, %15 : vector<512x64xf32>
      %17 = arith.truncf %16 : vector<512x64xf32> to vector<512x64xbf16>
      %cst_14 = arith.constant dense<0.000000e+00> : vector<512x64xf32>
      %18 = tpu.matmul %17, %2, %cst_14 {dimension_numbers = #tpu.dot_dimension_numbers<[1], [0], [0], [1], [0, 0, 1, 1], [], []>} : vector<512x64xbf16>, vector<64x64xbf16>, vector<512x64xf32> -> vector<512x64xf32>
      %19 = vector.broadcast %3 : vector<1x64xf32> to vector<512x64xf32>
      %20 = arith.addf %18, %19 : vector<512x64xf32>
      %cst_15 = arith.constant 0.000000e+00 : f32
      %21 = vector.broadcast %cst_15 : f32 to vector<512x64xf32>
      %22 = arith.maximumf %20, %21 : vector<512x64xf32>
      %23 = arith.truncf %22 : vector<512x64xf32> to vector<512x64xbf16>
      %cst_16 = arith.constant dense<0.000000e+00> : vector<512x4xf32>
      %24 = tpu.matmul %23, %4, %cst_16 {dimension_numbers = #tpu.dot_dimension_numbers<[1], [0], [0], [1], [0, 0, 1, 1], [], []>} : vector<512x64xbf16>, vector<64x4xbf16>, vector<512x4xf32> -> vector<512x4xf32>
      %25 = vector.broadcast %5 : vector<1x4xf32> to vector<512x4xf32>
      %26 = arith.addf %24, %25 : vector<512x4xf32>
      %cst_17 = arith.constant 0.000000e+00 : f32
      %27 = vector.broadcast %cst_17 : f32 to vector<512x4xf32>
      %28 = arith.maximumf %26, %27 : vector<512x4xf32>
      %29 = arith.index_cast %8 : i32 to index
      %c0_18 = arith.constant 0 : index
      %30 = vector.load %arg8[%29, %c0_18] : memref<1024x4xf32, #tpu.memory_space<vmem>>, vector<512x4xf32>
      tpu.vector_store %arg8[%29, %c0_18], %28 {strides = array<i32>} : memref<1024x4xf32, #tpu.memory_space<vmem>>, vector<512x4xf32>,
    }
    %c2_i32_11 = arith.constant 2 : i32
    return
  }
  func.func @transform_0(%arg0: i32) -> (i32, i32) {
    %c0_i32 = arith.constant 0 : i32
    %c0_i32_0 = arith.constant 0 : i32
    return %arg0, %c0_i32 : i32, i32
  }
  func.func @transform_1(%arg0: i32) -> (i32, i32) {
    %c0_i32 = arith.constant 0 : i32
    %c0_i32_0 = arith.constant 0 : i32
    %c0_i32_1 = arith.constant 0 : i32
    return %c0_i32, %c0_i32_0 : i32, i32
  }
  func.func @transform_2(%arg0: i32) -> (i32, i32) {
    %c0_i32 = arith.constant 0 : i32
    %c0_i32_0 = arith.constant 0 : i32
    %c0_i32_1 = arith.constant 0 : i32
    return %c0_i32, %c0_i32_0 : i32, i32
  }
  func.func @transform_3(%arg0: i32) -> (i32, i32) {
    %c0_i32 = arith.constant 0 : i32
    %c0_i32_0 = arith.constant 0 : i32
    %c0_i32_1 = arith.constant 0 : i32
    return %c0_i32, %c0_i32_0 : i32, i32
  }
  func.func @transform_4(%arg0: i32) -> (i32, i32) {
    %c0_i32 = arith.constant 0 : i32
    %c0_i32_0 = arith.constant 0 : i32
    %c0_i32_1 = arith.constant 0 : i32
    return %c0_i32, %c0_i32_0 : i32, i32
  }
  func.func @transform_5(%arg0: i32) -> (i32, i32) {
    %c0_i32 = arith.constant 0 : i32
    %c0_i32_0 = arith.constant 0 : i32
    %c0_i32_1 = arith.constant 0 : i32
    return %c0_i32, %c0_i32_0 : i32, i32
  }
  func.func @transform_6(%arg0: i32) -> (i32, i32) {
    %c0_i32 = arith.constant 0 : i32
    %c0_i32_0 = arith.constant 0 : i32
    %c0_i32_1 = arith.constant 0 : i32
    return %c0_i32, %c0_i32_0 : i32, i32
  }
  func.func @transform_7(%arg0: i32) -> (i32, i32) {
    %c0_i32 = arith.constant 0 : i32
    %c0_i32_0 = arith.constant 0 : i32
    return %arg0, %c0_i32 : i32, i32
  }
}

</mosaic_0001>

<bundles_post_ra>
// kernel: net_forward.1
= control target key start
LH: loop header
LB: loop body
LE: loop exit
PB: predicated region body
PF: predicated region fallthrough
CT: control target
= control target key end

     0   :  { %s2552_s24 = smov 0   ;;  %s3262_s0 = inlined_call_operand.vmem [shape: f32[4096,21], index: 0, kind: input, shape index: {}]   ;;  %s3263_s1 = inlined_call_operand.vmem [shape: bf16[21,64], index: 1, kind: input, shape index: {}]   ;;  %s3264_s2 = inlined_call_operand.vmem [shape: f32[1,64], index: 2, kind: input, shape index: {}]   ;;  %s3265_s3 = inlined_call_operand.vmem [shape: bf16[64,64], index: 3, kind: input, shape index: {}]   ;;  %s3266_s4 = inlined_call_operand.vmem [shape: f32[1,64], index: 4, kind: input, shape index: {}]   ;;  %s3267_s5 = inlined_call_operand.vmem [shape: bf16[64,4], index: 5, kind: input, shape index: {}]   ;;  %s3268_s6 = inlined_call_operand.vmem [shape: f32[1,4], index: 6, kind: input, shape index: {}]   ;;  %s3269_s7 = inlined_call_operand.vmem [shape: f32[4096,4], index: 7, kind: output, shape index: {}]  }
   0x1 LB: > { %s2035_s25 = sadd.s32 4294967295, %s2505_s24   ;;  %p2039_p0 = scmp.ge.s32.totalorder %s2505_s24, 1  ;;  %s2505_s24 = sphi %s2552_s24, %s17_s24  }
   0x2   : > { %p238_p1 = scmp.lt.s32.totalorder %s2505_s24, 5 }
   0x4   : > { %p239_p2 = pnand %p2039_p0, %p238_p1 }
   0x5   : > { %s2040_s26 = sshll.u32 (!%p239_p2), %s2035_s25, 7  ;;  %s2680_s12 = smov (!%p239_p2), 0  }
   0x6   : > { %242 = sbr.rel (%p239_p2) target bundleno = 768 (0x300), region = 48  ;;  %p271_p3 = scmp.lt.s32.totalorder (!%p239_p2), %s2040_s26, 511 }
   0xb   : > { %v2563_v0 = vld [vmem:[%s3263_s1] sm:$0xf]  ;;  %v2568_v1 = vld [vmem:[%s3263_s1 + $0x4] sm:$0xf]  ;;  %v2573_v2 = vld [vmem:[%s3263_s1 + $0x8] sm:$0x7] }
   0xc   : > { %v2578_v3 = vld [vmem:[%s3264_s2] ss:$0 sm:$0xff]  ;;  %v2588_v5 = vld [vmem:[%s3265_s3 + $0x4] sm:$0xf]  ;;  %v2593_v6 = vld [vmem:[%s3265_s3 + $0x8] sm:$0xf] }
   0xd   : > { %v2583_v4 = vld [vmem:[%s3265_s3] sm:$0xf]  ;;  %s3271_s26 = smov (!%p271_p3, %s2040_s26), 511  ;;  %v2598_v7 = vld [vmem:[%s3265_s3 + $0xc] sm:$0xf] }
   0xe   : > { %v2603_v8 = vld [vmem:[%s3265_s3 + $0x10] sm:$0xf]  ;;  %v2608_v9 = vld [vmem:[%s3265_s3 + $0x14] sm:$0xf]  ;;  %v2613_v10 = vld [vmem:[%s3265_s3 + $0x18] sm:$0xf] }
   0xf   : > { %v2618_v11 = vld [vmem:[%s3265_s3 + $0x1c] sm:$0xf]  ;;  %s2041_s30 = sshll.u32 %s3271_s26, 3  ;;  %v2623_v12 = vld [vmem:[%s3266_s4] ss:$0 sm:$0xff] }
  0x10   : > { %v2628_v13 = vld [vmem:[%s3267_s5] sm:$0xf]  ;;  %s2633_s14 = scalar_lea.vmem %s3262_s0, %s2041_s30  ;;  %s2638_s17 = scalar_lea.vmem %s3269_s7, %s2041_s30  ;;  %v2643_v14 = vld [vmem:[%s3267_s5 + $0x4] sm:$0xf]  ;;  %v2648_v15 = vld [vmem:[%s3267_s5 + $0x8] sm:$0xf] }
  0x11   : > { %v2653_v16 = vld [vmem:[%s3267_s5 + $0xc] sm:$0xf]  ;;  %v2658_v17 = vld [vmem:[%s3267_s5 + $0x10] sm:$0xf]  ;;  %v2663_v18 = vld [vmem:[%s3267_s5 + $0x14] sm:$0xf] }
  0x12   : > { %v2668_v19 = vld [vmem:[%s3267_s5 + $0x18] sm:$0xf]  ;;  %v2673_v20 = vld [vmem:[%s3267_s5 + $0x1c] sm:$0xf]  ;;  %v2678_v21 = vld [vmem:[%s3268_s6] ss:$0 sm:$0xff] }
  0x13 LB: >> { %v2047_v22 = vcombine.low %v2573_v2, %v2573_v2  ;;  %vm521_vm0 = vcmask 1041408   ;;  %vm522_vm1 = vcmask 1042432   ;;  %v2511_v23 = vmov 65535   ;;  %s2044_s13 = sshll.u32 %s2509_s12, 9  ;;  %s310_s12 = sadd.s32 1, %s2509_s12   ;;  %s2509_s12 = sphi %s2680_s12, %s310_s12  }
  0x14   : >> { %v523_v24 = vsel %vm521_vm0, 4294967295, %v2511_v23  ;;  %v2046_v27 = vcombine.low %v2563_v0, %v2568_v1  ;;  %s2693_s15 = scalar_lea.vmem %s2633_s14, %s2044_s13  ;;  %vm424_vm2 = vcmask 171008   ;;  %v2084_v35 = vcombine.low %v2613_v10, %v2618_v11  ;;  %s3063_s16 = scalar_lea.vmem %s2638_s17, %s2044_s13 }
  0x15   : >> { %v524_v25 = vsel %vm522_vm1, %v523_v24, 0  ;;  %v313_v28 = vld [vmem:[%s2693_s15] sm:$0xff]  ;;  %v314_v29 = vld [vmem:[%s2693_s15 + $0x8] sm:$0xff]  ;;  %v315_v31 = vld [vmem:[%s2693_s15 + $0x10] sm:$0xff]  ;;  %v2083_v52 = vcombine.low %v2603_v8, %v2608_v9  ;;  %v2082_v58 = vcombine.low %v2593_v6, %v2598_v7  ;;  %v2081_v24 = vcombine.low %v2583_v4, %v2588_v5  ;;  %p307_p4 = scmp.ge.s32.totalorder %s310_s12, 2  }
  0x16   : >> { %v526_v26 = vand.u32 %v2047_v22, %v524_v25  ;;  %v377_v30 = vpack.c.bf16 %v314_v29, %v313_v28  ;;  %v316_v32 = vld [vmem:[%s2693_s15 + $0x18] sm:$0xff]  ;;  %v317_v33 = vld [vmem:[%s2693_s15 + $0x20] sm:$0xff]  ;;  %v318_v34 = vld [vmem:[%s2693_s15 + $0x28] sm:$0xff]  ;;  %vm943_vm3 = vcmask 523264   ;;  %vm1905_vm4 = vcmask 31744  }
  0x17   : >> { %v378_v36 = vpack.c.bf16 %v316_v32, %v315_v31  ;;  %v379_v37 = vpack.c.bf16 %v318_v34, %v317_v33  ;;  %v319_v38 = vld [vmem:[%s2693_s15 + $0x30] sm:$0xff]  ;;  %v320_v39 = vld [vmem:[%s2693_s15 + $0x38] sm:$0xff]  ;;  %v321_v40 = vld [vmem:[%s2693_s15 + $0x40] sm:$0xff] }
  0x18   : >> { %2262 = vmatprep.subr.bf16.mxu0 %v526_v26  ;;  %2474 = vmatprep.subr.bf16.mxu1 %v526_v26  ;;  %v322_v41 = vld [vmem:[%s2693_s15 + $0x48] sm:$0xff]  ;;  %v345_v42 = vld [vmem:[%s2693_s15 + $0x100] sm:$0xff]  ;;  %v347_v44 = vld [vmem:[%s2693_s15 + $0x110] sm:$0xff]  ;;  %v380_v50 = vpack.c.bf16 %v320_v39, %v319_v38 }
  0x19   : >> { %2263 = vmatpush3.bf16.msra.mxu0 %v526_v26  ;;  %2476 = vmatpush3.bf16.msra.mxu1 %v526_v26  ;;  %v346_v43 = vld [vmem:[%s2693_s15 + $0x108] sm:$0xff]  ;;  %v348_v45 = vld [vmem:[%s2693_s15 + $0x118] sm:$0xff]  ;;  %v349_v48 = vld [vmem:[%s2693_s15 + $0x120] sm:$0xff]  ;;  %v381_v53 = vpack.c.bf16 %v322_v41, %v321_v40 }
  0x1a   : >> { %2264 = vmatprep.subr.bf16.mxu0 %v2046_v27  ;;  %2266 = vmatprep.mubr.msk.bf16.mxu0 %vm424_vm2, %v377_v30  ;;  %v393_v46 = vpack.c.bf16 %v346_v43, %v345_v42  ;;  %v394_v47 = vpack.c.bf16 %v348_v45, %v347_v44  ;;  %v350_v49 = vld [vmem:[%s2693_s15 + $0x128] sm:$0xff]  ;;  %v351_v54 = vld [vmem:[%s2693_s15 + $0x130] sm:$0xff]  ;;  %v352_v55 = vld [vmem:[%s2693_s15 + $0x138] sm:$0xff] }
  0x1b   : >> { %2475 = vmatprep.subr.bf16.mxu1 %v2046_v27  ;;  %v395_v51 = vpack.c.bf16 %v350_v49, %v349_v48  ;;  %v353_v56 = vld [vmem:[%s2693_s15 + $0x140] sm:$0xff]  ;;  %v354_v57 = vld [vmem:[%s2693_s15 + $0x148] sm:$0xff]  ;;  %v323_v59 = vld [vmem:[%s2693_s15 + $0x50] sm:$0xff]  ;;  %v396_v63 = vpack.c.bf16 %v352_v55, %v351_v54 }
  0x1c   : >> { %2298 = vmatprep.mubr.msk.bf16.mxu1 %vm424_vm2, %v393_v46  ;;  %v324_v60 = vld [vmem:[%s2693_s15 + $0x58] sm:$0xff]  ;;  %v325_v61 = vld [vmem:[%s2693_s15 + $0x60] sm:$0xff]  ;;  %v326_v62 = vld [vmem:[%s2693_s15 + $0x68] sm:$0xff]  ;;  %v397_v22 = vpack.c.bf16 %v354_v57, %v353_v56 }
  0x1d   : >> { %2265 = vmatpush3.bf16.msra.mxu0 %v2046_v27  ;;  %2477 = vmatpush3.bf16.msra.mxu1 %v2046_v27  ;;  %v382_v23 = vpack.c.bf16 %v324_v60, %v323_v59  ;;  %v383_v25 = vpack.c.bf16 %v326_v62, %v325_v61  ;;  %v355_v26 = vld [vmem:[%s2693_s15 + $0x150] sm:$0xff]  ;;  %v356_v27 = vld [vmem:[%s2693_s15 + $0x158] sm:$0xff]  ;;  %v357_v28 = vld [vmem:[%s2693_s15 + $0x160] sm:$0xff] }
  0x1e   : >> { %2330 = vmatprep.subr.bf16.mxu1 %v2084_v35  ;;  %v358_v29 = vld [vmem:[%s2693_s15 + $0x168] sm:$0xff]  ;;  %v327_v30 = vld [vmem:[%s2693_s15 + $0x70] sm:$0xff]  ;;  %v328_v31 = vld [vmem:[%s2693_s15 + $0x78] sm:$0xff]  ;;  %v398_v34 = vpack.c.bf16 %v356_v27, %v355_v26 }
  0x1f   : >> { %v329_v32 = vld [vmem:[%s2693_s15 + $0x80] sm:$0xff]  ;;  %v330_v33 = vld [vmem:[%s2693_s15 + $0x88] sm:$0xff]  ;;  %v359_v38 = vld [vmem:[%s2693_s15 + $0x170] sm:$0xff] }
  0x20   : >> { %2267 = vmatmul.mubr.msk.bf16.vlgmr.msra.gmra.mxu0 %vm424_vm2, %v378_v36  ;;  %2299 = vmatmul.mubr.msk.bf16.vlgmr.msra.gmra.mxu1 %vm424_vm2, %v394_v47  ;;  %v384_v36 = vpack.c.bf16 %v328_v31, %v327_v30  ;;  %v360_v39 = vld [vmem:[%s2693_s15 + $0x178] sm:$0xff]  ;;  %v361_v40 = vld [vmem:[%s2693_s15 + $0x180] sm:$0xff]  ;;  %v362_v41 = vld [vmem:[%s2693_s15 + $0x188] sm:$0xff] }
  0x21   : >> { %2270 = vmatprep.mubr.msk.bf16.mxu0 %vm424_vm2, %v379_v37  ;;  %2302 = vmatprep.mubr.msk.bf16.mxu1 %vm424_vm2, %v395_v51  ;;  %v385_v37 = vpack.c.bf16 %v330_v33, %v329_v32  ;;  %v331_v42 = vld [vmem:[%s2693_s15 + $0x90] sm:$0xff]  ;;  %v332_v43 = vld [vmem:[%s2693_s15 + $0x98] sm:$0xff]  ;;  %v333_v44 = vld [vmem:[%s2693_s15 + $0xa0] sm:$0xff]  ;;  %v400_v46 = vpack.c.bf16 %v360_v39, %v359_v38  ;;  %v401_v47 = vpack.c.bf16 %v362_v41, %v361_v40 }
  0x22   : >> { %2331 = vmatpush3.bf16.msra.mxu1 %v2084_v35  ;;  %v399_v35 = vpack.c.bf16 %v358_v29, %v357_v28  ;;  %v334_v45 = vld [vmem:[%s2693_s15 + $0xa8] sm:$0xff]  ;;  %v386_v48 = vpack.c.bf16 %v332_v43, %v331_v42  ;;  %v364_v51 = vld [vmem:[%s2693_s15 + $0x198] sm:$0xff]  ;;  %v335_v54 = vld [vmem:[%s2693_s15 + $0xb0] sm:$0xff] }
  0x23   : >> { %2332 = vmatprep.subr.bf16.mxu1 %v2083_v52  ;;  %v387_v49 = vpack.c.bf16 %v334_v45, %v333_v44  ;;  %v336_v55 = vld [vmem:[%s2693_s15 + $0xb8] sm:$0xff]  ;;  %v337_v56 = vld [vmem:[%s2693_s15 + $0xc0] sm:$0xff]  ;;  %v338_v57 = vld [vmem:[%s2693_s15 + $0xc8] sm:$0xff] }
  0x24   : >> { %v388_v60 = vpack.c.bf16 %v336_v55, %v335_v54  ;;  %v389_v61 = vpack.c.bf16 %v338_v57, %v337_v56  ;;  %v367_v62 = vld [vmem:[%s2693_s15 + $0x1b0] sm:$0xff]  ;;  %v341_v26 = vld [vmem:[%s2693_s15 + $0xe0] sm:$0xff]  ;;  %v342_v27 = vld [vmem:[%s2693_s15 + $0xe8] sm:$0xff] }
  0x25   : >> { %v391_v31 = vpack.c.bf16 %v342_v27, %v341_v26  ;;  %v371_v32 = vld [vmem:[%s2693_s15 + $0x1d0] sm:$0xff]  ;;  %v372_v33 = vld [vmem:[%s2693_s15 + $0x1d8] sm:$0xff] }
  0x26   : >> { %2333 = vmatpush3.bf16.msra.mxu1 %v2083_v52  ;;  %v365_v52 = vld [vmem:[%s2693_s15 + $0x1a0] sm:$0xff]  ;;  %v406_v38 = vpack.c.bf16 %v372_v33, %v371_v32  ;;  %v375_v41 = vld [vmem:[%s2693_s15 + $0x1f0] sm:$0xff]  ;;  %v376_v42 = vld [vmem:[%s2693_s15 + $0x1f8] sm:$0xff] }
  0x27   : >> { %2334 = vmatprep.subr.bf16.mxu1 %v2082_v58  ;;  %v408_v43 = vpack.c.bf16 %v376_v42, %v375_v41 }
  0x28   : >> { %2271 = vmatmul.mubr.msk.bf16.gmra.mxu0 %vm424_vm2, %v380_v50  ;;  %2303 = vmatmul.mubr.msk.bf16.gmra.mxu1 %vm424_vm2, %v396_v63  ;;  %v363_v50 = vld [vmem:[%s2693_s15 + $0x190] sm:$0xff]  ;;  %v368_v63 = vld [vmem:[%s2693_s15 + $0x1b8] sm:$0xff] }
  0x29   : >> { %2274 = vmatprep.mubr.msk.bf16.mxu0 %vm424_vm2, %v381_v53  ;;  %2306 = vmatprep.mubr.msk.bf16.mxu1 %vm424_vm2, %v397_v22  ;;  %v366_v53 = vld [vmem:[%s2693_s15 + $0x1a8] sm:$0xff]  ;;  %v369_v22 = vld [vmem:[%s2693_s15 + $0x1c0] sm:$0xff]  ;;  %v404_v28 = vpack.c.bf16 %v368_v63, %v367_v62  ;;  %v2119_v63 = vcombine.low %v2648_v15, %v2653_v16 }
  0x2a   : >> { %2335 = vmatpush3.bf16.msra.mxu1 %v2082_v58  ;;  %v402_v58 = vpack.c.bf16 %v364_v51, %v363_v50  ;;  %v403_v59 = vpack.c.bf16 %v366_v53, %v365_v52  ;;  %v2121_v52 = vcombine.low %v2668_v19, %v2673_v20  ;;  %v2120_v53 = vcombine.low %v2658_v17, %v2663_v18 }
  0x2b   : >> { %2336 = vmatprep.subr.bf16.mxu1 %v2081_v24 }
  0x2c   : >> { %2402 = vmatprep.subr.bf16.mxu0 %v2121_v52 }
  0x2d   : >> { %2403 = vmatpush3.bf16.msra.mxu0 %v2121_v52 }
  0x2e   : >> { %2337 = vmatpush3.bf16.msra.mxu1 %v2081_v24  ;;  %v339_v24 = vld [vmem:[%s2693_s15 + $0xd0] sm:$0xff]  ;;  %2404 = vmatprep.subr.bf16.mxu0 %v2120_v53 }
  0x30   : >> { %2275 = vmatmul.mubr.msk.bf16.gmra.mxu0 %vm424_vm2, %v382_v23  ;;  %2307 = vmatmul.mubr.msk.bf16.gmra.mxu1 %vm424_vm2, %v398_v34  ;;  %v370_v23 = vld [vmem:[%s2693_s15 + $0x1c8] sm:$0xff]  ;;  %v373_v34 = vld [vmem:[%s2693_s15 + $0x1e0] sm:$0xff] }
  0x31   : >> { %2278 = vmatprep.mubr.msk.bf16.mxu0 %vm424_vm2, %v383_v25  ;;  %2310 = vmatprep.mubr.msk.bf16.mxu1 %vm424_vm2, %v399_v35  ;;  %v340_v25 = vld [vmem:[%s2693_s15 + $0xd8] sm:$0xff]  ;;  %v405_v29 = vpack.c.bf16 %v370_v23, %v369_v22  ;;  %v374_v35 = vld [vmem:[%s2693_s15 + $0x1e8] sm:$0xff] }
  0x32   : >> { %v390_v30 = vpack.c.bf16 %v340_v25, %v339_v24  ;;  %v407_v39 = vpack.c.bf16 %v374_v35, %v373_v34  ;;  %2405 = vmatpush3.bf16.msra.mxu0 %v2120_v53 }
  0x33   : >> { %2406 = vmatprep.subr.bf16.mxu0 %v2119_v63 }
  0x36   : >> { %2407 = vmatpush3.bf16.msra.mxu0 %v2119_v63 }
  0x38   : >> { %2279 = vmatmul.mubr.msk.bf16.gmra.mxu0 %vm424_vm2, %v384_v36  ;;  %2311 = vmatmul.mubr.msk.bf16.gmra.mxu1 %vm424_vm2, %v400_v46  ;;  %v343_v36 = vld [vmem:[%s2693_s15 + $0xf0] sm:$0xff] }
  0x39   : >> { %2282 = vmatprep.mubr.msk.bf16.mxu0 %vm424_vm2, %v385_v37  ;;  %2314 = vmatprep.mubr.msk.bf16.mxu1 %vm424_vm2, %v401_v47  ;;  %v344_v37 = vld [vmem:[%s2693_s15 + $0xf8] sm:$0xff] }
  0x3a   : >> { %v392_v40 = vpack.c.bf16 %v344_v37, %v343_v36 }
  0x40   : >> { %2283 = vmatmul.mubr.msk.bf16.gmra.mxu0 %vm424_vm2, %v386_v48  ;;  %2315 = vmatmul.mubr.msk.bf16.gmra.mxu1 %vm424_vm2, %v402_v58 }
  0x41   : >> { %2286 = vmatprep.mubr.msk.bf16.mxu0 %vm424_vm2, %v387_v49  ;;  %2318 = vmatprep.mubr.msk.bf16.mxu1 %vm424_vm2, %v403_v59 }
  0x48   : >> { %2287 = vmatmul.mubr.msk.bf16.gmra.mxu0 %vm424_vm2, %v388_v60  ;;  %2319 = vmatmul.mubr.msk.bf16.gmra.mxu1 %vm424_vm2, %v404_v28 }
  0x49   : >> { %2290 = vmatprep.mubr.msk.bf16.mxu0 %vm424_vm2, %v389_v61  ;;  %2322 = vmatprep.mubr.msk.bf16.mxu1 %vm424_vm2, %v405_v29 }
  0x50   : >> { %2291 = vmatmul.mubr.msk.bf16.gmra.mxu0 %vm424_vm2, %v390_v30  ;;  %2323 = vmatmul.mubr.msk.bf16.gmra.mxu1 %vm424_vm2, %v406_v38 }
  0x51   : >> { %2294 = vmatprep.mubr.msk.bf16.mxu0 %vm424_vm2, %v391_v31  ;;  %2326 = vmatprep.mubr.msk.bf16.mxu1 %vm424_vm2, %v407_v39  ;;  %v2118_v31 = vcombine.low %v2628_v13, %v2643_v14 }
  0x53   : >> { %2408 = vmatprep.subr.bf16.mxu0 %v2118_v31 }
  0x54   : >> { %2409 = vmatpush3.bf16.msra.mxu0 %v2118_v31 }
  0x58   : >> { %2295 = vmatmul.mubr.msk.bf16.gmra.mxu0 %vm424_vm2, %v392_v40  ;;  %2327 = vmatmul.mubr.msk.bf16.gmra.mxu1 %vm424_vm2, %v408_v43 }
  0xe0   : >> { %v2268_v44 = vpop.f32.mrf.mxu0  ;;  %v2802_v51 = vpop.f32.mrf.mxu1 }
  0xe1   : >> { %v571_v49 = vadd.f32 %v2268_v44, %v2578_v3 }
  0xe2   : >> { %v562_v45 = vpop.f32.mrf.mxu0  ;;  %v2809_v57 = vpop.f32.mrf.mxu1 }
  0xe3   : >> { %v563_v47 = vadd.f32 %v2578_v3, %v562_v45  ;;  %v819_v60 = vmax.f32 %v571_v49, 0.0 }
  0xe4   : >> { %v2269_v46 = vpop.f32.mrf.mxu0  ;;  %v2811_v62 = vpop.f32.mrf.mxu1 }
  0xe5   : >> { %v574_v48 = vadd.f32 %v2269_v46, %v2578_v3  ;;  %v817_v58 = vmax.f32 %v563_v47, 0.0 }
  0xe6   : >> { %v565_v50 = vpop.f32.mrf.mxu0  ;;  %v2815_v25 = vpop.f32.mrf.mxu1 }
  0xe7   : >> { %v566_v54 = vadd.f32 %v2578_v3, %v565_v50  ;;  %v820_v55 = vmax.f32 %v574_v48, 0.0 }
  0xe8   : >> { %v2272_v56 = vpop.f32.mrf.mxu0  ;;  %v2822_v30 = vpop.f32.mrf.mxu1 }
  0xe9   : >> { %v818_v59 = vmax.f32 %v566_v54, 0.0  ;;  %v882_v23 = vpack.c.bf16 %v820_v55, %v819_v60  ;;  %v587_v28 = vadd.f32 %v2272_v56, %v2578_v3 }
  0xea   : >> { %v578_v61 = vpop.f32.mrf.mxu0  ;;  %v2827_v35 = vpop.f32.mrf.mxu1 }
  0xeb   : >> { %v881_v22 = vpack.c.bf16 %v818_v59, %v817_v58  ;;  %v579_v26 = vadd.f32 %v2578_v3, %v578_v61  ;;  %v823_v38 = vmax.f32 %v587_v28, 0.0 }
  0xec   : >> { %v2273_v24 = vpop.f32.mrf.mxu0  ;;  %v2829_v40 = vpop.f32.mrf.mxu1 }
  0xed   : >> { %v590_v27 = vadd.f32 %v2273_v24, %v2578_v3  ;;  %2338 = vmatprep.mubr.msk.bf16.mxu1 %vm943_vm3, %v881_v22  ;;  %v821_v36 = vmax.f32 %v579_v26, 0.0 }
  0xee   : >> { %v581_v29 = vpop.f32.mrf.mxu0  ;;  %2339 = vmatmul.mubr.msk.bf16.vlgmr.msra.gmra.mxu1 %vm943_vm3, %v882_v23  ;;  %v2831_v44 = vpop.f32.mrf.mxu1 }
  0xef   : >> { %v582_v32 = vadd.f32 %v2578_v3, %v581_v29  ;;  %v824_v33 = vmax.f32 %v590_v27, 0.0 }
  0xf0   : >> { %v2276_v34 = vpop.f32.mrf.mxu0  ;;  %v2838_v49 = vpop.f32.mrf.mxu1 }
  0xf1   : >> { %v822_v37 = vmax.f32 %v582_v32, 0.0  ;;  %v884_v42 = vpack.c.bf16 %v824_v33, %v823_v38  ;;  %v603_v47 = vadd.f32 %v2276_v34, %v2578_v3 }
  0xf2   : >> { %v594_v39 = vpop.f32.mrf.mxu0  ;;  %v2841_v54 = vpop.f32.mrf.mxu1 }
  0xf3   : >> { %v883_v41 = vpack.c.bf16 %v822_v37, %v821_v36  ;;  %v595_v45 = vadd.f32 %v2578_v3, %v594_v39  ;;  %v827_v58 = vmax.f32 %v603_v47, 0.0 }
  0xf4   : >> { %v2277_v43 = vpop.f32.mrf.mxu0  ;;  %v2843_v22 = vpop.f32.mrf.mxu1 }
  0xf5   : >> { %v606_v46 = vadd.f32 %v2277_v43, %v2578_v3  ;;  %2342 = vmatprep.mubr.msk.bf16.mxu1 %vm943_vm3, %v883_v41  ;;  %v825_v55 = vmax.f32 %v595_v45, 0.0 }
  0xf6   : >> { %v597_v48 = vpop.f32.mrf.mxu0  ;;  %2343 = vmatmul.mubr.msk.bf16.gmra.mxu1 %vm943_vm3, %v884_v42  ;;  %v2851_v32 = vpop.f32.mrf.mxu1 }
  0xf7   : >> { %v598_v50 = vadd.f32 %v2578_v3, %v597_v48  ;;  %v828_v52 = vmax.f32 %v606_v46, 0.0 }
  0xf8   : >> { %v2280_v53 = vpop.f32.mrf.mxu0  ;;  %v2853_v42 = vpop.f32.mrf.mxu1 }
  0xf9   : >> { %v826_v56 = vmax.f32 %v598_v50, 0.0  ;;  %v886_v61 = vpack.c.bf16 %v828_v52, %v827_v58  ;;  %v619_v26 = vadd.f32 %v2280_v53, %v2578_v3 }
  0xfa   : >> { %v610_v59 = vpop.f32.mrf.mxu0  ;;  %v2861_v53 = vpop.f32.mrf.mxu1 }
  0xfb   : >> { %v885_v60 = vpack.c.bf16 %v826_v56, %v825_v55  ;;  %v611_v23 = vadd.f32 %v2578_v3, %v610_v59  ;;  %v831_v36 = vmax.f32 %v619_v26, 0.0 }
  0xfc   : >> { %v2281_v63 = vpop.f32.mrf.mxu0 }
  0xfd   : >> { %v622_v24 = vadd.f32 %v2281_v63, %v2578_v3  ;;  %2346 = vmatprep.mubr.msk.bf16.mxu1 %vm943_vm3, %v885_v60  ;;  %v829_v33 = vmax.f32 %v611_v23, 0.0  ;;  %v2863_v23 = vpop.f32.mrf.mxu1 }
  0xfe   : >> { %v613_v27 = vpop.f32.mrf.mxu0  ;;  %2347 = vmatmul.mubr.msk.bf16.gmra.mxu1 %vm943_vm3, %v886_v61 }
  0xff   : >> { %v614_v28 = vadd.f32 %v2578_v3, %v613_v27  ;;  %v832_v29 = vmax.f32 %v622_v24, 0.0 }
 0x100   : >> { %v2284_v31 = vpop.f32.mrf.mxu0 }
 0x101   : >> { %v830_v34 = vmax.f32 %v614_v28, 0.0  ;;  %v888_v39 = vpack.c.bf16 %v832_v29, %v831_v36  ;;  %v635_v46 = vadd.f32 %v2284_v31, %v2578_v3 }
 0x102   : >> { %v626_v37 = vpop.f32.mrf.mxu0 }
 0x103   : >> { %v887_v38 = vpack.c.bf16 %v830_v34, %v829_v33  ;;  %v627_v43 = vadd.f32 %v2578_v3, %v626_v37  ;;  %v835_v58 = vmax.f32 %v635_v46, 0.0  ;;  %v2871_v34 = vpop.f32.mrf.mxu1 }
 0x104   : >> { %v2285_v41 = vpop.f32.mrf.mxu0 }
 0x105   : >> { %v638_v45 = vadd.f32 %v2285_v41, %v2578_v3  ;;  %2350 = vmatprep.mubr.msk.bf16.mxu1 %vm943_vm3, %v887_v38  ;;  %v833_v55 = vmax.f32 %v627_v43, 0.0  ;;  %v2873_v46 = vpop.f32.mrf.mxu1 }
 0x106   : >> { %v629_v47 = vpop.f32.mrf.mxu0  ;;  %2351 = vmatmul.mubr.msk.bf16.gmra.mxu1 %vm943_vm3, %v888_v39 }
 0x107   : >> { %v630_v48 = vadd.f32 %v2578_v3, %v629_v47  ;;  %v836_v50 = vmax.f32 %v638_v45, 0.0 }
 0x108   : >> { %v2288_v52 = vpop.f32.mrf.mxu0 }
 0x109   : >> { %v834_v56 = vmax.f32 %v630_v48, 0.0  ;;  %v890_v61 = vpack.c.bf16 %v836_v50, %v835_v58  ;;  %v651_v27 = vadd.f32 %v2288_v52, %v2578_v3 }
 0x10a   : >> { %v642_v59 = vpop.f32.mrf.mxu0 }
 0x10b   : >> { %v889_v60 = vpack.c.bf16 %v834_v56, %v833_v55  ;;  %v643_v24 = vadd.f32 %v2578_v3, %v642_v59  ;;  %v839_v38 = vmax.f32 %v651_v27, 0.0  ;;  %v2881_v59 = vpop.f32.mrf.mxu1  ;;  %v691_v27 = vadd.f32 %v2578_v3, %v2809_v57 }
 0x10c   : >> { %v2289_v63 = vpop.f32.mrf.mxu0 }
 0x10d   : >> { %v654_v26 = vadd.f32 %v2289_v63, %v2578_v3  ;;  %2354 = vmatprep.mubr.msk.bf16.mxu1 %vm943_vm3, %v889_v60  ;;  %v837_v36 = vmax.f32 %v643_v24, 0.0 }
 0x10e   : >> { %v645_v28 = vpop.f32.mrf.mxu0  ;;  %2355 = vmatmul.mubr.msk.bf16.gmra.mxu1 %vm943_vm3, %v890_v61 }
 0x10f   : >> { %v646_v29 = vadd.f32 %v2578_v3, %v645_v28  ;;  %v840_v31 = vmax.f32 %v654_v26, 0.0  ;;  %v694_v28 = vadd.f32 %v2578_v3, %v2815_v25 }
 0x110   : >> { %v2292_v33 = vpop.f32.mrf.mxu0 }
 0x111   : >> { %v838_v37 = vmax.f32 %v646_v29, 0.0  ;;  %v892_v43 = vpack.c.bf16 %v840_v31, %v839_v38  ;;  %v667_v50 = vadd.f32 %v2292_v33, %v2578_v3  ;;  %v2887_v33 = vpop.f32.mrf.mxu1 }
 0x112   : >> { %v658_v39 = vpop.f32.mrf.mxu0 }
 0x113   : >> { %v891_v41 = vpack.c.bf16 %v838_v37, %v837_v36  ;;  %v659_v47 = vadd.f32 %v2578_v3, %v658_v39  ;;  %v843_v63 = vmax.f32 %v667_v50, 0.0 }
 0x114   : >> { %v2293_v45 = vpop.f32.mrf.mxu0 }
 0x115   : >> { %v670_v48 = vadd.f32 %v2293_v45, %v2578_v3  ;;  %2358 = vmatprep.mubr.msk.bf16.mxu1 %vm943_vm3, %v891_v41  ;;  %v841_v60 = vmax.f32 %v659_v47, 0.0  ;;  %v849_v41 = vmax.f32 %v691_v27, 0.0  ;;  %v757_v45 = vpop.f32.mrf.mxu1 }
 0x116   : >> { %v661_v52 = vpop.f32.mrf.mxu0  ;;  %2359 = vmatmul.mubr.msk.bf16.gmra.mxu1 %vm943_vm3, %v892_v43  ;;  %v850_v43 = vmax.f32 %v694_v28, 0.0 }
 0x117   : >> { %v662_v55 = vadd.f32 %v2578_v3, %v661_v52  ;;  %v844_v56 = vmax.f32 %v670_v48, 0.0 }
 0x118   : >> { %v2296_v58 = vpop.f32.mrf.mxu0 }
 0x119   : >> { %v842_v61 = vmax.f32 %v662_v55, 0.0  ;;  %v894_v29 = vpack.c.bf16 %v844_v56, %v843_v63  ;;  %v683_v38 = vadd.f32 %v2296_v58, %v2578_v3  ;;  %v897_v55 = vpack.c.bf16 %v850_v43, %v849_v41 }
 0x11a   : >> { %v674_v24 = vpop.f32.mrf.mxu0  ;;  %v707_v56 = vadd.f32 %v2578_v3, %v2827_v35  ;;  %v710_v58 = vadd.f32 %v2578_v3, %v2831_v44  ;;  %v702_v63 = vadd.f32 %v2811_v62, %v2578_v3  ;;  %v726_v62 = vadd.f32 %v2578_v3, %v2851_v32 }
 0x11b   : >> { %v893_v26 = vpack.c.bf16 %v842_v61, %v841_v60  ;;  %v675_v36 = vadd.f32 %v2578_v3, %v674_v24  ;;  %v847_v50 = vmax.f32 %v683_v38, 0.0  ;;  %v699_v60 = vadd.f32 %v2802_v51, %v2578_v3  ;;  %v2903_v24 = vpop.f32.mrf.mxu1 }
 0x11c   : >> { %v2297_v31 = vpop.f32.mrf.mxu0  ;;  %v854_v35 = vmax.f32 %v710_v58, 0.0  ;;  %v852_v28 = vmax.f32 %v702_v63, 0.0  ;;  %v723_v51 = vadd.f32 %v2578_v3, %v2841_v54  ;;  %v858_v41 = vmax.f32 %v726_v62, 0.0 }
 0x11d   : >> { %v686_v37 = vadd.f32 %v2297_v31, %v2578_v3  ;;  %2362 = vmatprep.mubr.msk.bf16.mxu1 %vm943_vm3, %v893_v26  ;;  %v845_v47 = vmax.f32 %v675_v36, 0.0  ;;  %v853_v26 = vmax.f32 %v707_v56, 0.0  ;;  %v851_v27 = vmax.f32 %v699_v60, 0.0  ;;  %v770_v44 = vpop.f32.mrf.mxu1 }
 0x11e   : >> { %v677_v39 = vpop.f32.mrf.mxu0  ;;  %2363 = vmatmul.mubr.msk.bf16.gmra.mxu1 %vm943_vm3, %v894_v29  ;;  %v715_v36 = vadd.f32 %v2822_v30, %v2578_v3  ;;  %v739_v32 = vadd.f32 %v2578_v3, %v2861_v53  ;;  %v742_v30 = vadd.f32 %v2578_v3, %v2871_v34  ;;  %v755_v34 = vadd.f32 %v2578_v3, %v2881_v59 }
 0x11f   : >> { %v678_v57 = vadd.f32 %v2578_v3, %v677_v39  ;;  %v848_v25 = vmax.f32 %v686_v37, 0.0  ;;  %v899_v29 = vpack.c.bf16 %v854_v35, %v853_v26  ;;  %v898_v31 = vpack.c.bf16 %v852_v28, %v851_v27  ;;  %v2321_v38 = vpop.f32.mrf.mxu1 }
 0x120   : >> { %v718_v37 = vadd.f32 %v2829_v40, %v2578_v3  ;;  %v857_v39 = vmax.f32 %v723_v51, 0.0  ;;  %v731_v40 = vadd.f32 %v2838_v49, %v2578_v3  ;;  %v750_v63 = vadd.f32 %v2863_v23, %v2578_v3 }
 0x121   : >> { %v846_v48 = vmax.f32 %v678_v57, 0.0  ;;  %v896_v61 = vpack.c.bf16 %v848_v25, %v847_v50  ;;  %v855_v57 = vmax.f32 %v715_v36, 0.0  ;;  %v773_v54 = vpop.f32.mrf.mxu1  ;;  %v865_v35 = vmax.f32 %v755_v34, 0.0 }
 0x122   : >> { %v856_v43 = vmax.f32 %v718_v37, 0.0  ;;  %v901_v25 = vpack.c.bf16 %v858_v41, %v857_v39  ;;  %v859_v56 = vmax.f32 %v731_v40, 0.0  ;;  %v774_v62 = vadd.f32 %v2578_v3, %v773_v54 }
 0x123   : >> { %v895_v52 = vpack.c.bf16 %v846_v48, %v845_v47  ;;  %v734_v48 = vadd.f32 %v2843_v22, %v2578_v3  ;;  %v2324_v50 = vpop.f32.mrf.mxu1  ;;  %v747_v22 = vadd.f32 %v2853_v42, %v2578_v3  ;;  %v763_v42 = vadd.f32 %v2873_v46, %v2578_v3 }
 0x124   : >> { %v900_v47 = vpack.c.bf16 %v856_v43, %v855_v57  ;;  %v766_v23 = vadd.f32 %v2887_v33, %v2578_v3  ;;  %v870_v39 = vmax.f32 %v774_v62, 0.0  ;;  %v779_v46 = vadd.f32 %v2903_v24, %v2578_v3 }
 0x125   : >> { %2366 = vmatprep.mubr.msk.bf16.mxu1 %vm943_vm3, %v895_v52  ;;  %v861_v52 = vmax.f32 %v739_v32, 0.0  ;;  %v860_v58 = vmax.f32 %v734_v48, 0.0  ;;  %v786_v53 = vpop.f32.mrf.mxu1  ;;  %v863_v28 = vmax.f32 %v747_v22, 0.0  ;;  %v867_v41 = vmax.f32 %v763_v42, 0.0 }
 0x126   : >> { %2367 = vmatmul.mubr.msk.bf16.gmra.mxu1 %vm943_vm3, %v896_v61  ;;  %v758_v61 = vadd.f32 %v2578_v3, %v757_v45  ;;  %v771_v45 = vadd.f32 %v2578_v3, %v770_v44  ;;  %v868_v57 = vmax.f32 %v766_v23, 0.0  ;;  %v787_v54 = vadd.f32 %v2578_v3, %v786_v53 }
 0x127   : >> { %2370 = vmatprep.mubr.msk.bf16.mxu1 %vm943_vm3, %v897_v55  ;;  %v862_v55 = vmax.f32 %v742_v30, 0.0  ;;  %v902_v49 = vpack.c.bf16 %v860_v58, %v859_v56  ;;  %v2325_v26 = vpop.f32.mrf.mxu1  ;;  %v782_v33 = vadd.f32 %v2321_v38, %v2578_v3  ;;  %v871_v48 = vmax.f32 %v779_v46, 0.0 }
 0x128   : >> { %v866_v27 = vmax.f32 %v758_v61, 0.0  ;;  %v869_v37 = vmax.f32 %v771_v45, 0.0  ;;  %v906_v32 = vpack.c.bf16 %v868_v57, %v867_v41  ;;  %v795_v24 = vadd.f32 %v2324_v50, %v2578_v3 }
 0x129   : >> { %v903_v60 = vpack.c.bf16 %v862_v55, %v861_v52  ;;  %v789_v51 = vpop.f32.mrf.mxu1  ;;  %v872_v52 = vmax.f32 %v782_v33, 0.0  ;;  %v798_v38 = vadd.f32 %v2325_v26, %v2578_v3 }
 0x12a   : >> { %v905_v59 = vpack.c.bf16 %v866_v27, %v865_v35  ;;  %v907_v44 = vpack.c.bf16 %v870_v39, %v869_v37 }
 0x12b   : >> { %v2328_v36 = vpop.f32.mrf.mxu1  ;;  %v876_v22 = vmax.f32 %v798_v38, 0.0 }
 0x12c   : >> { %v811_v27 = vadd.f32 %v2328_v36, %v2578_v3 }
 0x12d   : >> { %v802_v43 = vpop.f32.mrf.mxu1 }
 0x12e   : >> { %2371 = vmatmul.mubr.msk.bf16.gmra.mxu1 %vm943_vm3, %v898_v31  ;;  %v803_v58 = vadd.f32 %v2578_v3, %v802_v43  ;;  %v879_v50 = vmax.f32 %v811_v27, 0.0 }
 0x12f   : >> { %2374 = vmatprep.mubr.msk.bf16.mxu1 %vm943_vm3, %v899_v29  ;;  %v864_v29 = vmax.f32 %v750_v63, 0.0  ;;  %v2329_v30 = vpop.f32.mrf.mxu1 }
 0x130   : >> { %v877_v34 = vmax.f32 %v803_v58, 0.0 }
 0x131   : >> { %v904_v31 = vpack.c.bf16 %v864_v29, %v863_v28  ;;  %v805_v55 = vpop.f32.mrf.mxu1  ;;  %v814_v28 = vadd.f32 %v2329_v30, %v2578_v3 }
 0x132   : >> { %v806_v53 = vadd.f32 %v2578_v3, %v805_v55 }
 0x133   : >> { %v880_v26 = vmax.f32 %v814_v28, 0.0 }
 0x134   : >> { %v878_v61 = vmax.f32 %v806_v53, 0.0 }
 0x135   : >> { %v912_v29 = vpack.c.bf16 %v880_v26, %v879_v50 }
 0x136   : >> { %2375 = vmatmul.mubr.msk.bf16.gmra.mxu1 %vm943_vm3, %v900_v47  ;;  %v873_v47 = vmax.f32 %v787_v54, 0.0  ;;  %v911_v63 = vpack.c.bf16 %v878_v61, %v877_v34 }
 0x137   : >> { %2378 = vmatprep.mubr.msk.bf16.mxu1 %vm943_vm3, %v901_v25  ;;  %v790_v25 = vadd.f32 %v2578_v3, %v789_v51 }
 0x139   : >> { %v874_v40 = vmax.f32 %v790_v25, 0.0 }
 0x13b   : >> { %v909_v56 = vpack.c.bf16 %v874_v40, %v873_v47 }
 0x13e   : >> { %2379 = vmatmul.mubr.msk.bf16.gmra.mxu1 %vm943_vm3, %v902_v49  ;;  %v875_v49 = vmax.f32 %v795_v24, 0.0 }
 0x13f   : >> { %2382 = vmatprep.mubr.msk.bf16.mxu1 %vm943_vm3, %v903_v60  ;;  %v908_v60 = vpack.c.bf16 %v872_v52, %v871_v48 }
 0x140   : >> { %v910_v35 = vpack.c.bf16 %v876_v22, %v875_v49 }
 0x146   : >> { %2383 = vmatmul.mubr.msk.bf16.gmra.mxu1 %vm943_vm3, %v904_v31 }
 0x147   : >> { %2386 = vmatprep.mubr.msk.bf16.mxu1 %vm943_vm3, %v905_v59 }
 0x14e   : >> { %2387 = vmatmul.mubr.msk.bf16.gmra.mxu1 %vm943_vm3, %v906_v32 }
 0x14f   : >> { %2390 = vmatprep.mubr.msk.bf16.mxu1 %vm943_vm3, %v907_v44 }
 0x156   : >> { %2391 = vmatmul.mubr.msk.bf16.gmra.mxu1 %vm943_vm3, %v908_v60 }
 0x157   : >> { %2394 = vmatprep.mubr.msk.bf16.mxu1 %vm943_vm3, %v909_v56 }
 0x15e   : >> { %2395 = vmatmul.mubr.msk.bf16.gmra.mxu1 %vm943_vm3, %v910_v35 }
 0x15f   : >> { %2398 = vmatprep.mubr.msk.bf16.mxu1 %vm943_vm3, %v911_v63 }
 0x166   : >> { %2399 = vmatmul.mubr.msk.bf16.gmra.mxu1 %vm943_vm3, %v912_v29 }
 0x1ae   : >> { %v2340_v51 = vpop.f32.mrf.mxu1 }
 0x1af   : >> { %v1083_v42 = vadd.f32 %v2340_v51, %v2623_v12 }
 0x1b0   : >> { %v1074_v59 = vpop.f32.mrf.mxu1 }
 0x1b1   : >> { %v1075_v62 = vadd.f32 %v2623_v12, %v1074_v59  ;;  %v1331_v43 = vmax.f32 %v1083_v42, 0.0 }
 0x1b2   : >> { %v2341_v45 = vpop.f32.mrf.mxu1 }
 0x1b3   : >> { %v1086_v31 = vadd.f32 %v2341_v45, %v2623_v12  ;;  %v1329_v41 = vmax.f32 %v1075_v62, 0.0 }
 0x1b4   : >> { %v1077_v23 = vpop.f32.mrf.mxu1 }
 0x1b5   : >> { %v1078_v36 = vadd.f32 %v2623_v12, %v1077_v23  ;;  %v1332_v37 = vmax.f32 %v1086_v31, 0.0 }
 0x1b6   : >> { %v2344_v39 = vpop.f32.mrf.mxu1 }
 0x1b7   : >> { %v1330_v57 = vmax.f32 %v1078_v36, 0.0  ;;  %v1394_v25 = vpack.c.bf16 %v1332_v37, %v1331_v43  ;;  %v1099_v30 = vadd.f32 %v2344_v39, %v2623_v12 }
 0x1b8   : >> { %v1090_v44 = vpop.f32.mrf.mxu1 }
 0x1b9   : >> { %v1393_v54 = vpack.c.bf16 %v1330_v57, %v1329_v41  ;;  %v1091_v46 = vadd.f32 %v2623_v12, %v1090_v44  ;;  %v1335_v58 = vmax.f32 %v1099_v30, 0.0 }
 0x1ba   : >> { %v2345_v32 = vpop.f32.mrf.mxu1 }
 0x1bb   : >> { %v1102_v33 = vadd.f32 %v2345_v32, %v2623_v12  ;;  %2410 = vmatprep.mubr.msk.bf16.mxu0 %vm943_vm3, %v1393_v54  ;;  %v1333_v55 = vmax.f32 %v1091_v46, 0.0 }
 0x1bc   : >> { %v1093_v47 = vpop.f32.mrf.mxu1  ;;  %2411 = vmatmul.mubr.msk.bf16.vlgmr.msra.gmra.mxu0 %vm943_vm3, %v1394_v25 }
 0x1bd   : >> { %v1094_v40 = vadd.f32 %v2623_v12, %v1093_v47  ;;  %v1336_v48 = vmax.f32 %v1102_v33, 0.0 }
 0x1be   : >> { %v2348_v52 = vpop.f32.mrf.mxu1 }
 0x1bf   : >> { %v1334_v56 = vmax.f32 %v1094_v40, 0.0  ;;  %v1396_v24 = vpack.c.bf16 %v1336_v48, %v1335_v58  ;;  %v1115_v49 = vadd.f32 %v2348_v52, %v2623_v12 }
 0x1c0   : >> { %v1106_v53 = vpop.f32.mrf.mxu1 }
 0x1c1   : >> { %v1395_v60 = vpack.c.bf16 %v1334_v56, %v1333_v55  ;;  %v1107_v34 = vadd.f32 %v2623_v12, %v1106_v53  ;;  %v1339_v26 = vmax.f32 %v1115_v49, 0.0 }
 0x1c2   : >> { %v2349_v38 = vpop.f32.mrf.mxu1 }
 0x1c3   : >> { %v1118_v61 = vadd.f32 %v2349_v38, %v2623_v12  ;;  %2414 = vmatprep.mubr.msk.bf16.mxu0 %vm943_vm3, %v1395_v60  ;;  %v1337_v28 = vmax.f32 %v1107_v34, 0.0 }
 0x1c4   : >> { %v1109_v22 = vpop.f32.mrf.mxu1  ;;  %2415 = vmatmul.mubr.msk.bf16.gmra.mxu0 %vm943_vm3, %v1396_v24 }
 0x1c5   : >> { %v1110_v63 = vadd.f32 %v2623_v12, %v1109_v22  ;;  %v1340_v35 = vmax.f32 %v1118_v61, 0.0 }
 0x1c6   : >> { %v2352_v27 = vpop.f32.mrf.mxu1 }
 0x1c7   : >> { %v1338_v50 = vmax.f32 %v1110_v63, 0.0  ;;  %v1398_v59 = vpack.c.bf16 %v1340_v35, %v1339_v26  ;;  %v1131_v42 = vadd.f32 %v2352_v27, %v2623_v12 }
 0x1c8   : >> { %v1122_v29 = vpop.f32.mrf.mxu1 }
 0x1c9   : >> { %v1397_v51 = vpack.c.bf16 %v1338_v50, %v1337_v28  ;;  %v1123_v62 = vadd.f32 %v2623_v12, %v1122_v29  ;;  %v1343_v43 = vmax.f32 %v1131_v42, 0.0 }
 0x1ca   : >> { %v2353_v45 = vpop.f32.mrf.mxu1 }
 0x1cb   : >> { %v1134_v31 = vadd.f32 %v2353_v45, %v2623_v12  ;;  %2418 = vmatprep.mubr.msk.bf16.mxu0 %vm943_vm3, %v1397_v51  ;;  %v1341_v41 = vmax.f32 %v1123_v62, 0.0 }
 0x1cc   : >> { %v1125_v23 = vpop.f32.mrf.mxu1  ;;  %2419 = vmatmul.mubr.msk.bf16.gmra.mxu0 %vm943_vm3, %v1398_v59 }
 0x1cd   : >> { %v1126_v36 = vadd.f32 %v2623_v12, %v1125_v23  ;;  %v1344_v37 = vmax.f32 %v1134_v31, 0.0 }
 0x1ce   : >> { %v2356_v39 = vpop.f32.mrf.mxu1 }
 0x1cf   : >> { %v1342_v57 = vmax.f32 %v1126_v36, 0.0  ;;  %v1400_v25 = vpack.c.bf16 %v1344_v37, %v1343_v43  ;;  %v1147_v30 = vadd.f32 %v2356_v39, %v2623_v12 }
 0x1d0   : >> { %v1138_v44 = vpop.f32.mrf.mxu1 }
 0x1d1   : >> { %v1399_v54 = vpack.c.bf16 %v1342_v57, %v1341_v41  ;;  %v1139_v46 = vadd.f32 %v2623_v12, %v1138_v44  ;;  %v1347_v58 = vmax.f32 %v1147_v30, 0.0 }
 0x1d2   : >> { %v2357_v32 = vpop.f32.mrf.mxu1 }
 0x1d3   : >> { %v1150_v33 = vadd.f32 %v2357_v32, %v2623_v12  ;;  %2422 = vmatprep.mubr.msk.bf16.mxu0 %vm943_vm3, %v1399_v54  ;;  %v1345_v55 = vmax.f32 %v1139_v46, 0.0 }
 0x1d4   : >> { %v1141_v47 = vpop.f32.mrf.mxu1  ;;  %2423 = vmatmul.mubr.msk.bf16.gmra.mxu0 %vm943_vm3, %v1400_v25 }
 0x1d5   : >> { %v1142_v40 = vadd.f32 %v2623_v12, %v1141_v47  ;;  %v1348_v48 = vmax.f32 %v1150_v33, 0.0 }
 0x1d6   : >> { %v2360_v52 = vpop.f32.mrf.mxu1 }
 0x1d7   : >> { %v1346_v56 = vmax.f32 %v1142_v40, 0.0  ;;  %v1402_v24 = vpack.c.bf16 %v1348_v48, %v1347_v58  ;;  %v1163_v49 = vadd.f32 %v2360_v52, %v2623_v12 }
 0x1d8   : >> { %v1154_v53 = vpop.f32.mrf.mxu1 }
 0x1d9   : >> { %v1401_v60 = vpack.c.bf16 %v1346_v56, %v1345_v55  ;;  %v1155_v34 = vadd.f32 %v2623_v12, %v1154_v53  ;;  %v1351_v26 = vmax.f32 %v1163_v49, 0.0 }
 0x1da   : >> { %v2361_v38 = vpop.f32.mrf.mxu1 }
 0x1db   : >> { %v1166_v61 = vadd.f32 %v2361_v38, %v2623_v12  ;;  %2426 = vmatprep.mubr.msk.bf16.mxu0 %vm943_vm3, %v1401_v60  ;;  %v1349_v28 = vmax.f32 %v1155_v34, 0.0 }
 0x1dc   : >> { %v1157_v22 = vpop.f32.mrf.mxu1  ;;  %2427 = vmatmul.mubr.msk.bf16.gmra.mxu0 %vm943_vm3, %v1402_v24 }
 0x1dd   : >> { %v1158_v63 = vadd.f32 %v2623_v12, %v1157_v22  ;;  %v1352_v35 = vmax.f32 %v1166_v61, 0.0 }
 0x1de   : >> { %v2364_v27 = vpop.f32.mrf.mxu1 }
 0x1df   : >> { %v1350_v50 = vmax.f32 %v1158_v63, 0.0  ;;  %v1404_v59 = vpack.c.bf16 %v1352_v35, %v1351_v26  ;;  %v1179_v42 = vadd.f32 %v2364_v27, %v2623_v12 }
 0x1e0   : >> { %v1170_v29 = vpop.f32.mrf.mxu1 }
 0x1e1   : >> { %v1403_v51 = vpack.c.bf16 %v1350_v50, %v1349_v28  ;;  %v1171_v62 = vadd.f32 %v2623_v12, %v1170_v29  ;;  %v1355_v43 = vmax.f32 %v1179_v42, 0.0 }
 0x1e2   : >> { %v2365_v45 = vpop.f32.mrf.mxu1 }
 0x1e3   : >> { %v1182_v31 = vadd.f32 %v2365_v45, %v2623_v12  ;;  %2430 = vmatprep.mubr.msk.bf16.mxu0 %vm943_vm3, %v1403_v51  ;;  %v1353_v41 = vmax.f32 %v1171_v62, 0.0 }
 0x1e4   : >> { %v1173_v23 = vpop.f32.mrf.mxu1  ;;  %2431 = vmatmul.mubr.msk.bf16.gmra.mxu0 %vm943_vm3, %v1404_v59 }
 0x1e5   : >> { %v1174_v36 = vadd.f32 %v2623_v12, %v1173_v23  ;;  %v1356_v37 = vmax.f32 %v1182_v31, 0.0 }
 0x1e6   : >> { %v2368_v39 = vpop.f32.mrf.mxu1 }
 0x1e7   : >> { %v1354_v57 = vmax.f32 %v1174_v36, 0.0  ;;  %v1406_v25 = vpack.c.bf16 %v1356_v37, %v1355_v43  ;;  %v1195_v30 = vadd.f32 %v2368_v39, %v2623_v12 }
 0x1e8   : >> { %v1186_v44 = vpop.f32.mrf.mxu1 }
 0x1e9   : >> { %v1405_v54 = vpack.c.bf16 %v1354_v57, %v1353_v41  ;;  %v1187_v46 = vadd.f32 %v2623_v12, %v1186_v44  ;;  %v1359_v58 = vmax.f32 %v1195_v30, 0.0 }
 0x1ea   : >> { %v2369_v32 = vpop.f32.mrf.mxu1 }
 0x1eb   : >> { %v1198_v33 = vadd.f32 %v2369_v32, %v2623_v12  ;;  %2434 = vmatprep.mubr.msk.bf16.mxu0 %vm943_vm3, %v1405_v54  ;;  %v1357_v55 = vmax.f32 %v1187_v46, 0.0 }
 0x1ec   : >> { %v1189_v47 = vpop.f32.mrf.mxu1  ;;  %2435 = vmatmul.mubr.msk.bf16.gmra.mxu0 %vm943_vm3, %v1406_v25 }
 0x1ed   : >> { %v1190_v40 = vadd.f32 %v2623_v12, %v1189_v47  ;;  %v1360_v48 = vmax.f32 %v1198_v33, 0.0 }
 0x1ee   : >> { %v2372_v52 = vpop.f32.mrf.mxu1 }
 0x1ef   : >> { %v1358_v56 = vmax.f32 %v1190_v40, 0.0  ;;  %v1408_v24 = vpack.c.bf16 %v1360_v48, %v1359_v58  ;;  %v1211_v49 = vadd.f32 %v2372_v52, %v2623_v12 }
 0x1f0   : >> { %v1202_v53 = vpop.f32.mrf.mxu1 }
 0x1f1   : >> { %v1407_v60 = vpack.c.bf16 %v1358_v56, %v1357_v55  ;;  %v1203_v34 = vadd.f32 %v2623_v12, %v1202_v53  ;;  %v1363_v26 = vmax.f32 %v1211_v49, 0.0 }
 0x1f2   : >> { %v2373_v38 = vpop.f32.mrf.mxu1 }
 0x1f3   : >> { %v1214_v61 = vadd.f32 %v2373_v38, %v2623_v12  ;;  %2438 = vmatprep.mubr.msk.bf16.mxu0 %vm943_vm3, %v1407_v60  ;;  %v1361_v28 = vmax.f32 %v1203_v34, 0.0 }
 0x1f4   : >> { %v1205_v22 = vpop.f32.mrf.mxu1  ;;  %2439 = vmatmul.mubr.msk.bf16.gmra.mxu0 %vm943_vm3, %v1408_v24 }
 0x1f5   : >> { %v1206_v63 = vadd.f32 %v2623_v12, %v1205_v22  ;;  %v1364_v35 = vmax.f32 %v1214_v61, 0.0 }
 0x1f6   : >> { %v2376_v27 = vpop.f32.mrf.mxu1 }
 0x1f7   : >> { %v1362_v50 = vmax.f32 %v1206_v63, 0.0  ;;  %v1410_v59 = vpack.c.bf16 %v1364_v35, %v1363_v26  ;;  %v1227_v42 = vadd.f32 %v2376_v27, %v2623_v12 }
 0x1f8   : >> { %v1218_v29 = vpop.f32.mrf.mxu1 }
 0x1f9   : >> { %v1409_v51 = vpack.c.bf16 %v1362_v50, %v1361_v28  ;;  %v1219_v62 = vadd.f32 %v2623_v12, %v1218_v29  ;;  %v1367_v43 = vmax.f32 %v1227_v42, 0.0 }
 0x1fa   : >> { %v2377_v45 = vpop.f32.mrf.mxu1 }
 0x1fb   : >> { %v1230_v31 = vadd.f32 %v2377_v45, %v2623_v12  ;;  %2442 = vmatprep.mubr.msk.bf16.mxu0 %vm943_vm3, %v1409_v51  ;;  %v1365_v41 = vmax.f32 %v1219_v62, 0.0 }
 0x1fc   : >> { %v1221_v23 = vpop.f32.mrf.mxu1  ;;  %2443 = vmatmul.mubr.msk.bf16.gmra.mxu0 %vm943_vm3, %v1410_v59 }
 0x1fd   : >> { %v1222_v36 = vadd.f32 %v2623_v12, %v1221_v23  ;;  %v1368_v37 = vmax.f32 %v1230_v31, 0.0 }
 0x1fe   : >> { %v2380_v39 = vpop.f32.mrf.mxu1 }
 0x1ff   : >> { %v1366_v57 = vmax.f32 %v1222_v36, 0.0  ;;  %v1412_v25 = vpack.c.bf16 %v1368_v37, %v1367_v43  ;;  %v1243_v30 = vadd.f32 %v2380_v39, %v2623_v12 }
 0x200   : >> { %v1234_v44 = vpop.f32.mrf.mxu1 }
 0x201   : >> { %v1411_v54 = vpack.c.bf16 %v1366_v57, %v1365_v41  ;;  %v1235_v46 = vadd.f32 %v2623_v12, %v1234_v44  ;;  %v1371_v58 = vmax.f32 %v1243_v30, 0.0 }
 0x202   : >> { %v2381_v32 = vpop.f32.mrf.mxu1 }
 0x203   : >> { %v1246_v33 = vadd.f32 %v2381_v32, %v2623_v12  ;;  %2446 = vmatprep.mubr.msk.bf16.mxu0 %vm943_vm3, %v1411_v54  ;;  %v1369_v55 = vmax.f32 %v1235_v46, 0.0 }
 0x204   : >> { %v1237_v47 = vpop.f32.mrf.mxu1  ;;  %2447 = vmatmul.mubr.msk.bf16.gmra.mxu0 %vm943_vm3, %v1412_v25 }
 0x205   : >> { %v1238_v40 = vadd.f32 %v2623_v12, %v1237_v47  ;;  %v1372_v48 = vmax.f32 %v1246_v33, 0.0 }
 0x206   : >> { %v2384_v52 = vpop.f32.mrf.mxu1 }
 0x207   : >> { %v1370_v56 = vmax.f32 %v1238_v40, 0.0  ;;  %v1414_v24 = vpack.c.bf16 %v1372_v48, %v1371_v58  ;;  %v1259_v49 = vadd.f32 %v2384_v52, %v2623_v12 }
 0x208   : >> { %v1250_v53 = vpop.f32.mrf.mxu1 }
 0x209   : >> { %v1413_v60 = vpack.c.bf16 %v1370_v56, %v1369_v55  ;;  %v1251_v34 = vadd.f32 %v2623_v12, %v1250_v53  ;;  %v1375_v26 = vmax.f32 %v1259_v49, 0.0 }
 0x20a   : >> { %v2385_v38 = vpop.f32.mrf.mxu1 }
 0x20b   : >> { %v1262_v61 = vadd.f32 %v2385_v38, %v2623_v12  ;;  %2450 = vmatprep.mubr.msk.bf16.mxu0 %vm943_vm3, %v1413_v60  ;;  %v1373_v28 = vmax.f32 %v1251_v34, 0.0 }
 0x20c   : >> { %v1253_v22 = vpop.f32.mrf.mxu1  ;;  %2451 = vmatmul.mubr.msk.bf16.gmra.mxu0 %vm943_vm3, %v1414_v24 }
 0x20d   : >> { %v1254_v63 = vadd.f32 %v2623_v12, %v1253_v22  ;;  %v1376_v35 = vmax.f32 %v1262_v61, 0.0 }
 0x20e   : >> { %v2388_v27 = vpop.f32.mrf.mxu1 }
 0x20f   : >> { %v1374_v50 = vmax.f32 %v1254_v63, 0.0  ;;  %v1416_v59 = vpack.c.bf16 %v1376_v35, %v1375_v26  ;;  %v1275_v42 = vadd.f32 %v2388_v27, %v2623_v12 }
 0x210   : >> { %v1266_v29 = vpop.f32.mrf.mxu1 }
 0x211   : >> { %v1415_v51 = vpack.c.bf16 %v1374_v50, %v1373_v28  ;;  %v1267_v62 = vadd.f32 %v2623_v12, %v1266_v29  ;;  %v1379_v43 = vmax.f32 %v1275_v42, 0.0 }
 0x212   : >> { %v2389_v45 = vpop.f32.mrf.mxu1 }
 0x213   : >> { %v1278_v31 = vadd.f32 %v2389_v45, %v2623_v12  ;;  %2454 = vmatprep.mubr.msk.bf16.mxu0 %vm943_vm3, %v1415_v51  ;;  %v1377_v41 = vmax.f32 %v1267_v62, 0.0 }
 0x214   : >> { %v1269_v23 = vpop.f32.mrf.mxu1  ;;  %2455 = vmatmul.mubr.msk.bf16.gmra.mxu0 %vm943_vm3, %v1416_v59 }
 0x215   : >> { %v1270_v36 = vadd.f32 %v2623_v12, %v1269_v23  ;;  %v1380_v37 = vmax.f32 %v1278_v31, 0.0 }
 0x216   : >> { %v2392_v39 = vpop.f32.mrf.mxu1 }
 0x217   : >> { %v1378_v57 = vmax.f32 %v1270_v36, 0.0  ;;  %v1418_v25 = vpack.c.bf16 %v1380_v37, %v1379_v43  ;;  %v1291_v30 = vadd.f32 %v2392_v39, %v2623_v12 }
 0x218   : >> { %v1282_v44 = vpop.f32.mrf.mxu1 }
 0x219   : >> { %v1417_v54 = vpack.c.bf16 %v1378_v57, %v1377_v41  ;;  %v1283_v46 = vadd.f32 %v2623_v12, %v1282_v44  ;;  %v1383_v58 = vmax.f32 %v1291_v30, 0.0 }
 0x21a   : >> { %v2393_v32 = vpop.f32.mrf.mxu1 }
 0x21b   : >> { %v1294_v33 = vadd.f32 %v2393_v32, %v2623_v12  ;;  %2458 = vmatprep.mubr.msk.bf16.mxu0 %vm943_vm3, %v1417_v54  ;;  %v1381_v55 = vmax.f32 %v1283_v46, 0.0 }
 0x21c   : >> { %v1285_v47 = vpop.f32.mrf.mxu1  ;;  %2459 = vmatmul.mubr.msk.bf16.gmra.mxu0 %vm943_vm3, %v1418_v25 }
 0x21d   : >> { %v1286_v40 = vadd.f32 %v2623_v12, %v1285_v47  ;;  %v1384_v48 = vmax.f32 %v1294_v33, 0.0 }
 0x21e   : >> { %v2396_v52 = vpop.f32.mrf.mxu1 }
 0x21f   : >> { %v1382_v56 = vmax.f32 %v1286_v40, 0.0  ;;  %v1420_v24 = vpack.c.bf16 %v1384_v48, %v1383_v58  ;;  %v1307_v49 = vadd.f32 %v2396_v52, %v2623_v12 }
 0x220   : >> { %v1298_v53 = vpop.f32.mrf.mxu1 }
 0x221   : >> { %v1419_v60 = vpack.c.bf16 %v1382_v56, %v1381_v55  ;;  %v1299_v34 = vadd.f32 %v2623_v12, %v1298_v53  ;;  %v1387_v26 = vmax.f32 %v1307_v49, 0.0 }
 0x222   : >> { %v2397_v38 = vpop.f32.mrf.mxu1 }
 0x223   : >> { %v1310_v61 = vadd.f32 %v2397_v38, %v2623_v12  ;;  %2462 = vmatprep.mubr.msk.bf16.mxu0 %vm943_vm3, %v1419_v60  ;;  %v1385_v28 = vmax.f32 %v1299_v34, 0.0 }
 0x224   : >> { %v1301_v22 = vpop.f32.mrf.mxu1  ;;  %2463 = vmatmul.mubr.msk.bf16.gmra.mxu0 %vm943_vm3, %v1420_v24 }
 0x225   : >> { %v1302_v63 = vadd.f32 %v2623_v12, %v1301_v22  ;;  %v1388_v35 = vmax.f32 %v1310_v61, 0.0 }
 0x226   : >> { %v2400_v27 = vpop.f32.mrf.mxu1 }
 0x227   : >> { %v1386_v50 = vmax.f32 %v1302_v63, 0.0  ;;  %v1422_v59 = vpack.c.bf16 %v1388_v35, %v1387_v26  ;;  %v1323_v42 = vadd.f32 %v2400_v27, %v2623_v12 }
 0x228   : >> { %v1314_v29 = vpop.f32.mrf.mxu1 }
 0x229   : >> { %v1421_v51 = vpack.c.bf16 %v1386_v50, %v1385_v28  ;;  %v1315_v62 = vadd.f32 %v2623_v12, %v1314_v29  ;;  %v1391_v57 = vmax.f32 %v1323_v42, 0.0 }
 0x22a   : >> { %v2401_v45 = vpop.f32.mrf.mxu1 }
 0x22b   : >> { %v1326_v31 = vadd.f32 %v2401_v45, %v2623_v12  ;;  %2466 = vmatprep.mubr.msk.bf16.mxu0 %vm943_vm3, %v1421_v51  ;;  %v1389_v39 = vmax.f32 %v1315_v62, 0.0 }
 0x22c   : >> { %v1317_v23 = vpop.f32.mrf.mxu1  ;;  %2467 = vmatmul.mubr.msk.bf16.gmra.mxu0 %vm943_vm3, %v1422_v59 }
 0x22d   : >> { %v1318_v36 = vadd.f32 %v2623_v12, %v1317_v23  ;;  %v1392_v37 = vmax.f32 %v1326_v31, 0.0 }
 0x22f   : >> { %v1390_v41 = vmax.f32 %v1318_v36, 0.0  ;;  %v1424_v44 = vpack.c.bf16 %v1392_v37, %v1391_v57 }
 0x231   : >> { %v1423_v43 = vpack.c.bf16 %v1390_v41, %v1389_v39 }
 0x233   : >> { %2470 = vmatprep.mubr.msk.bf16.mxu0 %vm943_vm3, %v1423_v43 }
 0x234   : >> { %2471 = vmatmul.mubr.msk.bf16.gmra.mxu0 %vm943_vm3, %v1424_v44 }
 0x27c   : >> { %v2412_v54 = vpop.f32.mrf.mxu0 }
 0x27d   : >> { %v1594_v25 = vadd.f32 %v2412_v54, %v2678_v21 }
 0x27e   : >> { %v1585_v32 = vpop.f32.mrf.mxu0 }
 0x27f   : >> { %v1842_v46 = vmax.f32 %v1594_v25, 0.0  ;;  %v1586_v33 = vadd.f32 %v2678_v21, %v1585_v32 }
 0x280   : >> { %v2413_v30 = vpop.f32.mrf.mxu0 }
 0x281   : >> { %1908 = vst.msk [vmem:[%s3063_s16 + $0x10] sm:$0xff] %vm1905_vm4, %v1842_v46  ;;  %v1840_v47 = vmax.f32 %v1586_v33, 0.0  ;;  %v1597_v40 = vadd.f32 %v2413_v30, %v2678_v21 }
 0x282   : >> { %v1588_v48 = vpop.f32.mrf.mxu0 }
 0x283   : >> { %1906 = vst.msk [vmem:[%s3063_s16] sm:$0xff] %vm1905_vm4, %v1840_v47  ;;  %v1843_v52 = vmax.f32 %v1597_v40, 0.0  ;;  %v1589_v55 = vadd.f32 %v2678_v21, %v1588_v48 }
 0x284   : >> { %v2416_v56 = vpop.f32.mrf.mxu0 }
 0x285   : >> { %1909 = vst.msk [vmem:[%s3063_s16 + $0x18] sm:$0xff] %vm1905_vm4, %v1843_v52  ;;  %v1841_v58 = vmax.f32 %v1589_v55, 0.0  ;;  %v1610_v53 = vadd.f32 %v2416_v56, %v2678_v21 }
 0x286   : >> { %v1601_v60 = vpop.f32.mrf.mxu0 }
 0x287   : >> { %1907 = vst.msk [vmem:[%s3063_s16 + $0x8] sm:$0xff] %vm1905_vm4, %v1841_v58  ;;  %v1846_v24 = vmax.f32 %v1610_v53, 0.0  ;;  %v1602_v38 = vadd.f32 %v2678_v21, %v1601_v60 }
 0x288   : >> { %v2417_v34 = vpop.f32.mrf.mxu0 }
 0x289   : >> { %1912 = vst.msk [vmem:[%s3063_s16 + $0x30] sm:$0xff] %vm1905_vm4, %v1846_v24  ;;  %v1844_v61 = vmax.f32 %v1602_v38, 0.0  ;;  %v1613_v49 = vadd.f32 %v2417_v34, %v2678_v21 }
 0x28a   : >> { %v1604_v22 = vpop.f32.mrf.mxu0 }
 0x28b   : >> { %1910 = vst.msk [vmem:[%s3063_s16 + $0x20] sm:$0xff] %vm1905_vm4, %v1844_v61  ;;  %v1847_v63 = vmax.f32 %v1613_v49, 0.0  ;;  %v1605_v35 = vadd.f32 %v2678_v21, %v1604_v22 }
 0x28c   : >> { %v2420_v27 = vpop.f32.mrf.mxu0 }
 0x28d   : >> { %1913 = vst.msk [vmem:[%s3063_s16 + $0x38] sm:$0xff] %vm1905_vm4, %v1847_v63  ;;  %v1845_v28 = vmax.f32 %v1605_v35, 0.0  ;;  %v1626_v50 = vadd.f32 %v2420_v27, %v2678_v21 }
 0x28e   : >> { %v1617_v26 = vpop.f32.mrf.mxu0 }
 0x28f   : >> { %1911 = vst.msk [vmem:[%s3063_s16 + $0x28] sm:$0xff] %vm1905_vm4, %v1845_v28  ;;  %v1850_v29 = vmax.f32 %v1626_v50, 0.0  ;;  %v1618_v51 = vadd.f32 %v2678_v21, %v1617_v26 }
 0x290   : >> { %v2421_v59 = vpop.f32.mrf.mxu0 }
 0x291   : >> { %1916 = vst.msk [vmem:[%s3063_s16 + $0x50] sm:$0xff] %vm1905_vm4, %v1850_v29  ;;  %v1848_v45 = vmax.f32 %v1618_v51, 0.0  ;;  %v1629_v62 = vadd.f32 %v2421_v59, %v2678_v21 }
 0x292   : >> { %v1620_v31 = vpop.f32.mrf.mxu0 }
 0x293   : >> { %1914 = vst.msk [vmem:[%s3063_s16 + $0x40] sm:$0xff] %vm1905_vm4, %v1848_v45  ;;  %v1851_v42 = vmax.f32 %v1629_v62, 0.0  ;;  %v1621_v23 = vadd.f32 %v2678_v21, %v1620_v31 }
 0x294   : >> { %v2424_v36 = vpop.f32.mrf.mxu0 }
 0x295   : >> { %1917 = vst.msk [vmem:[%s3063_s16 + $0x58] sm:$0xff] %vm1905_vm4, %v1851_v42  ;;  %v1849_v37 = vmax.f32 %v1621_v23, 0.0  ;;  %v1642_v39 = vadd.f32 %v2424_v36, %v2678_v21 }
 0x296   : >> { %v1633_v41 = vpop.f32.mrf.mxu0 }
 0x297   : >> { %1915 = vst.msk [vmem:[%s3063_s16 + $0x48] sm:$0xff] %vm1905_vm4, %v1849_v37  ;;  %v1854_v57 = vmax.f32 %v1642_v39, 0.0  ;;  %v1634_v43 = vadd.f32 %v2678_v21, %v1633_v41 }
 0x298   : >> { %v2425_v44 = vpop.f32.mrf.mxu0 }
 0x299   : >> { %1920 = vst.msk [vmem:[%s3063_s16 + $0x70] sm:$0xff] %vm1905_vm4, %v1854_v57  ;;  %v1852_v54 = vmax.f32 %v1634_v43, 0.0  ;;  %v1645_v25 = vadd.f32 %v2425_v44, %v2678_v21 }
 0x29a   : >> { %v1636_v32 = vpop.f32.mrf.mxu0 }
 0x29b   : >> { %1918 = vst.msk [vmem:[%s3063_s16 + $0x60] sm:$0xff] %vm1905_vm4, %v1852_v54  ;;  %v1855_v46 = vmax.f32 %v1645_v25, 0.0  ;;  %v1637_v33 = vadd.f32 %v2678_v21, %v1636_v32 }
 0x29c   : >> { %v2428_v30 = vpop.f32.mrf.mxu0 }
 0x29d   : >> { %1921 = vst.msk [vmem:[%s3063_s16 + $0x78] sm:$0xff] %vm1905_vm4, %v1855_v46  ;;  %v1853_v47 = vmax.f32 %v1637_v33, 0.0  ;;  %v1658_v40 = vadd.f32 %v2428_v30, %v2678_v21 }
 0x29e   : >> { %v1649_v48 = vpop.f32.mrf.mxu0 }
 0x29f   : >> { %1919 = vst.msk [vmem:[%s3063_s16 + $0x68] sm:$0xff] %vm1905_vm4, %v1853_v47  ;;  %v1858_v52 = vmax.f32 %v1658_v40, 0.0  ;;  %v1650_v55 = vadd.f32 %v2678_v21, %v1649_v48 }
 0x2a0   : >> { %v2429_v56 = vpop.f32.mrf.mxu0 }
 0x2a1   : >> { %1924 = vst.msk [vmem:[%s3063_s16 + $0x90] sm:$0xff] %vm1905_vm4, %v1858_v52  ;;  %v1856_v58 = vmax.f32 %v1650_v55, 0.0  ;;  %v1661_v53 = vadd.f32 %v2429_v56, %v2678_v21 }
 0x2a2   : >> { %v1652_v60 = vpop.f32.mrf.mxu0 }
 0x2a3   : >> { %1922 = vst.msk [vmem:[%s3063_s16 + $0x80] sm:$0xff] %vm1905_vm4, %v1856_v58  ;;  %v1859_v24 = vmax.f32 %v1661_v53, 0.0  ;;  %v1653_v38 = vadd.f32 %v2678_v21, %v1652_v60 }
 0x2a4   : >> { %v2432_v34 = vpop.f32.mrf.mxu0 }
 0x2a5   : >> { %1925 = vst.msk [vmem:[%s3063_s16 + $0x98] sm:$0xff] %vm1905_vm4, %v1859_v24  ;;  %v1857_v61 = vmax.f32 %v1653_v38, 0.0  ;;  %v1674_v49 = vadd.f32 %v2432_v34, %v2678_v21 }
 0x2a6   : >> { %v1665_v22 = vpop.f32.mrf.mxu0 }
 0x2a7   : >> { %1923 = vst.msk [vmem:[%s3063_s16 + $0x88] sm:$0xff] %vm1905_vm4, %v1857_v61  ;;  %v1862_v63 = vmax.f32 %v1674_v49, 0.0  ;;  %v1666_v35 = vadd.f32 %v2678_v21, %v1665_v22 }
 0x2a8   : >> { %v2433_v27 = vpop.f32.mrf.mxu0 }
 0x2a9   : >> { %1928 = vst.msk [vmem:[%s3063_s16 + $0xb0] sm:$0xff] %vm1905_vm4, %v1862_v63  ;;  %v1860_v28 = vmax.f32 %v1666_v35, 0.0  ;;  %v1677_v50 = vadd.f32 %v2433_v27, %v2678_v21 }
 0x2aa   : >> { %v1668_v26 = vpop.f32.mrf.mxu0 }
 0x2ab   : >> { %1926 = vst.msk [vmem:[%s3063_s16 + $0xa0] sm:$0xff] %vm1905_vm4, %v1860_v28  ;;  %v1863_v29 = vmax.f32 %v1677_v50, 0.0  ;;  %v1669_v51 = vadd.f32 %v2678_v21, %v1668_v26 }
 0x2ac   : >> { %v2436_v59 = vpop.f32.mrf.mxu0 }
 0x2ad   : >> { %1929 = vst.msk [vmem:[%s3063_s16 + $0xb8] sm:$0xff] %vm1905_vm4, %v1863_v29  ;;  %v1861_v45 = vmax.f32 %v1669_v51, 0.0  ;;  %v1690_v62 = vadd.f32 %v2436_v59, %v2678_v21 }
 0x2ae   : >> { %v1681_v31 = vpop.f32.mrf.mxu0 }
 0x2af   : >> { %1927 = vst.msk [vmem:[%s3063_s16 + $0xa8] sm:$0xff] %vm1905_vm4, %v1861_v45  ;;  %v1866_v42 = vmax.f32 %v1690_v62, 0.0  ;;  %v1682_v23 = vadd.f32 %v2678_v21, %v1681_v31 }
 0x2b0   : >> { %v2437_v36 = vpop.f32.mrf.mxu0 }
 0x2b1   : >> { %1932 = vst.msk [vmem:[%s3063_s16 + $0xd0] sm:$0xff] %vm1905_vm4, %v1866_v42  ;;  %v1864_v37 = vmax.f32 %v1682_v23, 0.0  ;;  %v1693_v39 = vadd.f32 %v2437_v36, %v2678_v21 }
 0x2b2   : >> { %v1684_v41 = vpop.f32.mrf.mxu0 }
 0x2b3   : >> { %1930 = vst.msk [vmem:[%s3063_s16 + $0xc0] sm:$0xff] %vm1905_vm4, %v1864_v37  ;;  %v1867_v57 = vmax.f32 %v1693_v39, 0.0  ;;  %v1685_v43 = vadd.f32 %v2678_v21, %v1684_v41 }
 0x2b4   : >> { %v2440_v44 = vpop.f32.mrf.mxu0 }
 0x2b5   : >> { %1933 = vst.msk [vmem:[%s3063_s16 + $0xd8] sm:$0xff] %vm1905_vm4, %v1867_v57  ;;  %v1865_v54 = vmax.f32 %v1685_v43, 0.0  ;;  %v1706_v25 = vadd.f32 %v2440_v44, %v2678_v21 }
 0x2b6   : >> { %v1697_v32 = vpop.f32.mrf.mxu0 }
 0x2b7   : >> { %1931 = vst.msk [vmem:[%s3063_s16 + $0xc8] sm:$0xff] %vm1905_vm4, %v1865_v54  ;;  %v1870_v46 = vmax.f32 %v1706_v25, 0.0  ;;  %v1698_v33 = vadd.f32 %v2678_v21, %v1697_v32 }
 0x2b8   : >> { %v2441_v30 = vpop.f32.mrf.mxu0 }
 0x2b9   : >> { %1936 = vst.msk [vmem:[%s3063_s16 + $0xf0] sm:$0xff] %vm1905_vm4, %v1870_v46  ;;  %v1868_v47 = vmax.f32 %v1698_v33, 0.0  ;;  %v1709_v40 = vadd.f32 %v2441_v30, %v2678_v21 }
 0x2ba   : >> { %v1700_v48 = vpop.f32.mrf.mxu0 }
 0x2bb   : >> { %1934 = vst.msk [vmem:[%s3063_s16 + $0xe0] sm:$0xff] %vm1905_vm4, %v1868_v47  ;;  %v1871_v52 = vmax.f32 %v1709_v40, 0.0  ;;  %v1701_v55 = vadd.f32 %v2678_v21, %v1700_v48 }
 0x2bc   : >> { %v2444_v56 = vpop.f32.mrf.mxu0 }
 0x2bd   : >> { %1937 = vst.msk [vmem:[%s3063_s16 + $0xf8] sm:$0xff] %vm1905_vm4, %v1871_v52  ;;  %v1869_v58 = vmax.f32 %v1701_v55, 0.0  ;;  %v1722_v53 = vadd.f32 %v2444_v56, %v2678_v21 }
 0x2be   : >> { %v1713_v60 = vpop.f32.mrf.mxu0 }
 0x2bf   : >> { %1935 = vst.msk [vmem:[%s3063_s16 + $0xe8] sm:$0xff] %vm1905_vm4, %v1869_v58  ;;  %v1874_v24 = vmax.f32 %v1722_v53, 0.0  ;;  %v1714_v38 = vadd.f32 %v2678_v21, %v1713_v60 }
 0x2c0   : >> { %v2445_v34 = vpop.f32.mrf.mxu0 }
 0x2c1   : >> { %1940 = vst.msk [vmem:[%s3063_s16 + $0x110] sm:$0xff] %vm1905_vm4, %v1874_v24  ;;  %v1872_v61 = vmax.f32 %v1714_v38, 0.0  ;;  %v1725_v49 = vadd.f32 %v2445_v34, %v2678_v21 }
 0x2c2   : >> { %v1716_v22 = vpop.f32.mrf.mxu0 }
 0x2c3   : >> { %1938 = vst.msk [vmem:[%s3063_s16 + $0x100] sm:$0xff] %vm1905_vm4, %v1872_v61  ;;  %v1875_v63 = vmax.f32 %v1725_v49, 0.0  ;;  %v1717_v35 = vadd.f32 %v2678_v21, %v1716_v22 }
 0x2c4   : >> { %v2448_v27 = vpop.f32.mrf.mxu0 }
 0x2c5   : >> { %1941 = vst.msk [vmem:[%s3063_s16 + $0x118] sm:$0xff] %vm1905_vm4, %v1875_v63  ;;  %v1873_v28 = vmax.f32 %v1717_v35, 0.0  ;;  %v1738_v50 = vadd.f32 %v2448_v27, %v2678_v21 }
 0x2c6   : >> { %v1729_v26 = vpop.f32.mrf.mxu0 }
 0x2c7   : >> { %1939 = vst.msk [vmem:[%s3063_s16 + $0x108] sm:$0xff] %vm1905_vm4, %v1873_v28  ;;  %v1878_v29 = vmax.f32 %v1738_v50, 0.0  ;;  %v1730_v51 = vadd.f32 %v2678_v21, %v1729_v26 }
 0x2c8   : >> { %v2449_v59 = vpop.f32.mrf.mxu0 }
 0x2c9   : >> { %1944 = vst.msk [vmem:[%s3063_s16 + $0x130] sm:$0xff] %vm1905_vm4, %v1878_v29  ;;  %v1876_v45 = vmax.f32 %v1730_v51, 0.0  ;;  %v1741_v62 = vadd.f32 %v2449_v59, %v2678_v21 }
 0x2ca   : >> { %v1732_v31 = vpop.f32.mrf.mxu0 }
 0x2cb   : >> { %1942 = vst.msk [vmem:[%s3063_s16 + $0x120] sm:$0xff] %vm1905_vm4, %v1876_v45  ;;  %v1879_v42 = vmax.f32 %v1741_v62, 0.0  ;;  %v1733_v23 = vadd.f32 %v2678_v21, %v1732_v31 }
 0x2cc   : >> { %v2452_v36 = vpop.f32.mrf.mxu0 }
 0x2cd   : >> { %1945 = vst.msk [vmem:[%s3063_s16 + $0x138] sm:$0xff] %vm1905_vm4, %v1879_v42  ;;  %v1877_v37 = vmax.f32 %v1733_v23, 0.0  ;;  %v1754_v39 = vadd.f32 %v2452_v36, %v2678_v21 }
 0x2ce   : >> { %v1745_v41 = vpop.f32.mrf.mxu0 }
 0x2cf   : >> { %1943 = vst.msk [vmem:[%s3063_s16 + $0x128] sm:$0xff] %vm1905_vm4, %v1877_v37  ;;  %v1882_v57 = vmax.f32 %v1754_v39, 0.0  ;;  %v1746_v43 = vadd.f32 %v2678_v21, %v1745_v41 }
 0x2d0   : >> { %v2453_v44 = vpop.f32.mrf.mxu0 }
 0x2d1   : >> { %1948 = vst.msk [vmem:[%s3063_s16 + $0x150] sm:$0xff] %vm1905_vm4, %v1882_v57  ;;  %v1880_v54 = vmax.f32 %v1746_v43, 0.0  ;;  %v1757_v25 = vadd.f32 %v2453_v44, %v2678_v21 }
 0x2d2   : >> { %v1748_v32 = vpop.f32.mrf.mxu0 }
 0x2d3   : >> { %1946 = vst.msk [vmem:[%s3063_s16 + $0x140] sm:$0xff] %vm1905_vm4, %v1880_v54  ;;  %v1883_v46 = vmax.f32 %v1757_v25, 0.0  ;;  %v1749_v33 = vadd.f32 %v2678_v21, %v1748_v32 }
 0x2d4   : >> { %v2456_v30 = vpop.f32.mrf.mxu0 }
 0x2d5   : >> { %1949 = vst.msk [vmem:[%s3063_s16 + $0x158] sm:$0xff] %vm1905_vm4, %v1883_v46  ;;  %v1881_v47 = vmax.f32 %v1749_v33, 0.0  ;;  %v1770_v40 = vadd.f32 %v2456_v30, %v2678_v21 }
 0x2d6   : >> { %v1761_v48 = vpop.f32.mrf.mxu0 }
 0x2d7   : >> { %1947 = vst.msk [vmem:[%s3063_s16 + $0x148] sm:$0xff] %vm1905_vm4, %v1881_v47  ;;  %v1886_v52 = vmax.f32 %v1770_v40, 0.0  ;;  %v1762_v55 = vadd.f32 %v2678_v21, %v1761_v48 }
 0x2d8   : >> { %v2457_v56 = vpop.f32.mrf.mxu0 }
 0x2d9   : >> { %1952 = vst.msk [vmem:[%s3063_s16 + $0x170] sm:$0xff] %vm1905_vm4, %v1886_v52  ;;  %v1884_v58 = vmax.f32 %v1762_v55, 0.0  ;;  %v1773_v53 = vadd.f32 %v2457_v56, %v2678_v21 }
 0x2da   : >> { %v1764_v60 = vpop.f32.mrf.mxu0 }
 0x2db   : >> { %1950 = vst.msk [vmem:[%s3063_s16 + $0x160] sm:$0xff] %vm1905_vm4, %v1884_v58  ;;  %v1887_v24 = vmax.f32 %v1773_v53, 0.0  ;;  %v1765_v38 = vadd.f32 %v2678_v21, %v1764_v60 }
 0x2dc   : >> { %v2460_v34 = vpop.f32.mrf.mxu0 }
 0x2dd   : >> { %1953 = vst.msk [vmem:[%s3063_s16 + $0x178] sm:$0xff] %vm1905_vm4, %v1887_v24  ;;  %v1885_v61 = vmax.f32 %v1765_v38, 0.0  ;;  %v1786_v49 = vadd.f32 %v2460_v34, %v2678_v21 }
 0x2de   : >> { %v1777_v22 = vpop.f32.mrf.mxu0 }
 0x2df   : >> { %1951 = vst.msk [vmem:[%s3063_s16 + $0x168] sm:$0xff] %vm1905_vm4, %v1885_v61  ;;  %v1890_v63 = vmax.f32 %v1786_v49, 0.0  ;;  %v1778_v35 = vadd.f32 %v2678_v21, %v1777_v22 }
 0x2e0   : >> { %v2461_v27 = vpop.f32.mrf.mxu0 }
 0x2e1   : >> { %1956 = vst.msk [vmem:[%s3063_s16 + $0x190] sm:$0xff] %vm1905_vm4, %v1890_v63  ;;  %v1888_v28 = vmax.f32 %v1778_v35, 0.0  ;;  %v1789_v50 = vadd.f32 %v2461_v27, %v2678_v21 }
 0x2e2   : >> { %v1780_v26 = vpop.f32.mrf.mxu0 }
 0x2e3   : >> { %1954 = vst.msk [vmem:[%s3063_s16 + $0x180] sm:$0xff] %vm1905_vm4, %v1888_v28  ;;  %v1891_v29 = vmax.f32 %v1789_v50, 0.0  ;;  %v1781_v51 = vadd.f32 %v2678_v21, %v1780_v26 }
 0x2e4   : >> { %v2464_v59 = vpop.f32.mrf.mxu0 }
 0x2e5   : >> { %1957 = vst.msk [vmem:[%s3063_s16 + $0x198] sm:$0xff] %vm1905_vm4, %v1891_v29  ;;  %v1889_v45 = vmax.f32 %v1781_v51, 0.0  ;;  %v1802_v62 = vadd.f32 %v2464_v59, %v2678_v21 }
 0x2e6   : >> { %v1793_v31 = vpop.f32.mrf.mxu0 }
 0x2e7   : >> { %1955 = vst.msk [vmem:[%s3063_s16 + $0x188] sm:$0xff] %vm1905_vm4, %v1889_v45  ;;  %v1894_v42 = vmax.f32 %v1802_v62, 0.0  ;;  %v1794_v23 = vadd.f32 %v2678_v21, %v1793_v31 }
 0x2e8   : >> { %v2465_v36 = vpop.f32.mrf.mxu0 }
 0x2e9   : >> { %1960 = vst.msk [vmem:[%s3063_s16 + $0x1b0] sm:$0xff] %vm1905_vm4, %v1894_v42  ;;  %v1892_v37 = vmax.f32 %v1794_v23, 0.0  ;;  %v1805_v39 = vadd.f32 %v2465_v36, %v2678_v21 }
 0x2ea   : >> { %v1796_v41 = vpop.f32.mrf.mxu0 }
 0x2eb   : >> { %1958 = vst.msk [vmem:[%s3063_s16 + $0x1a0] sm:$0xff] %vm1905_vm4, %v1892_v37  ;;  %v1895_v57 = vmax.f32 %v1805_v39, 0.0  ;;  %v1797_v43 = vadd.f32 %v2678_v21, %v1796_v41 }
 0x2ec   : >> { %v2468_v44 = vpop.f32.mrf.mxu0 }
 0x2ed   : >> { %1961 = vst.msk [vmem:[%s3063_s16 + $0x1b8] sm:$0xff] %vm1905_vm4, %v1895_v57  ;;  %v1893_v54 = vmax.f32 %v1797_v43, 0.0  ;;  %v1818_v25 = vadd.f32 %v2468_v44, %v2678_v21 }
 0x2ee   : >> { %v1809_v32 = vpop.f32.mrf.mxu0 }
 0x2ef   : >> { %1959 = vst.msk [vmem:[%s3063_s16 + $0x1a8] sm:$0xff] %vm1905_vm4, %v1893_v54  ;;  %v1898_v46 = vmax.f32 %v1818_v25, 0.0  ;;  %v1810_v33 = vadd.f32 %v2678_v21, %v1809_v32 }
 0x2f0   : >> { %v2469_v30 = vpop.f32.mrf.mxu0 }
 0x2f1   : >> { %1964 = vst.msk [vmem:[%s3063_s16 + $0x1d0] sm:$0xff] %vm1905_vm4, %v1898_v46  ;;  %v1896_v47 = vmax.f32 %v1810_v33, 0.0  ;;  %v1821_v40 = vadd.f32 %v2469_v30, %v2678_v21 }
 0x2f2   : >> { %v1812_v48 = vpop.f32.mrf.mxu0 }
 0x2f3   : >> { %1962 = vst.msk [vmem:[%s3063_s16 + $0x1c0] sm:$0xff] %vm1905_vm4, %v1896_v47  ;;  %v1899_v52 = vmax.f32 %v1821_v40, 0.0  ;;  %v1813_v55 = vadd.f32 %v2678_v21, %v1812_v48 }
 0x2f4   : >> { %v2472_v56 = vpop.f32.mrf.mxu0 }
 0x2f5   : >> { %1965 = vst.msk [vmem:[%s3063_s16 + $0x1d8] sm:$0xff] %vm1905_vm4, %v1899_v52  ;;  %v1897_v58 = vmax.f32 %v1813_v55, 0.0  ;;  %v1834_v53 = vadd.f32 %v2472_v56, %v2678_v21 }
 0x2f6   : >> { %v1825_v60 = vpop.f32.mrf.mxu0 }
 0x2f7   : >> { %1963 = vst.msk [vmem:[%s3063_s16 + $0x1c8] sm:$0xff] %vm1905_vm4, %v1897_v58  ;;  %v1902_v24 = vmax.f32 %v1834_v53, 0.0  ;;  %v1826_v38 = vadd.f32 %v2678_v21, %v1825_v60 }
 0x2f8   : >> { %v2473_v34 = vpop.f32.mrf.mxu0 }
 0x2f9   : >> { %1968 = vst.msk [vmem:[%s3063_s16 + $0x1f0] sm:$0xff] %vm1905_vm4, %v1902_v24  ;;  %v1900_v61 = vmax.f32 %v1826_v38, 0.0  ;;  %v1837_v49 = vadd.f32 %v2473_v34, %v2678_v21 }
 0x2fa   : >> { %v1828_v22 = vpop.f32.mrf.mxu0 }
 0x2fb   : >> { %1966 = vst.msk [vmem:[%s3063_s16 + $0x1e0] sm:$0xff] %vm1905_vm4, %v1900_v61  ;;  %v1903_v63 = vmax.f32 %v1837_v49, 0.0  ;;  %v1829_v35 = vadd.f32 %v2678_v21, %v1828_v22  ;;  %309 = sbr.rel (!%p307_p4) target bundleno = 19 (0x13), region = 87 }
 0x2fd   : >> { %1969 = vst.msk [vmem:[%s3063_s16 + $0x1f8] sm:$0xff] %vm1905_vm4, %v1903_v63  ;;  %v1901_v27 = vmax.f32 %v1829_v35, 0.0 }
 0x2ff   : >> { %1967 = vst.msk [vmem:[%s3063_s16 + $0x1e8] sm:$0xff] %vm1905_vm4, %v1901_v27 }
 0x300 PF: > { %s17_s24 = sadd.s32 1, %s2505_s24  }
 0x301   : > { %p14_p5 = scmp.ge.s32.totalorder %s17_s24, 6  }
 0x303   :  { %16 = sbr.rel (!%p14_p5) target bundleno = 1 (0x1), region = 98 }

</bundles_post_ra>
